<compile_context>
chip_gen: v7x
topology: tpu7x:2x2x1
jax: 0.10.0
libtpu: 0.0.40
codegen_flags: <defaults>
</compile_context>

<pallas_src>
import jax
import jax.numpy as jnp
from jax import lax
from jax.experimental import pallas as pl
from jax.experimental.pallas import tpu as pltpu


# ------------------------------ fused kernel ------------------------------- #

def _graph_match_kernel(
        vg_n_ref, qg_n_ref, vg_e_ref, qg_e_ref, vg_m_ref, qg_m_ref,
        fc1_w_ref, fc1_b_ref, fc2_w_ref, fc2_b_ref,
        ge_wa_ref, ge_ba_ref, ge_wu_ref, ge_bu_ref,
        ga_wa_ref, ga_ba_ref, ga_wu_ref, ga_bu_ref,
        sim_A_ref, gma_A_ref, cg_w_ref, cg_b_ref,
        xg_o_ref):
    """One grid step == the full GraphMatch forward for one batch element."""
    D = fc1_w_ref.shape[1]
    L = ge_wa_ref.shape[0]
    Nv = vg_n_ref.shape[1]

    vg_e = vg_e_ref[0].astype(jnp.bfloat16)      # (Nv, Nv) static adjacency
    qg_e = qg_e_ref[0].astype(jnp.bfloat16)      # (Nq, Nq)
    vg_pad = vg_m_ref[0]                         # (1, Nv) f32, 1.0 == padded
    qg_pad = qg_m_ref[0]                         # (1, Nq)

    def dot(a, b):
        # bf16 MXU operands, f32 accumulation (weights already stored as bf16).
        return jnp.dot(a.astype(jnp.bfloat16), b.astype(jnp.bfloat16),
                       preferred_element_type=jnp.float32)

    def dot_t(a, b):
        # a @ b.T expressed as a trailing-dim contraction so the MXU consumes
        # both operands directly (no XLU transpose/relayout of `b`).
        return lax.dot_general(a.astype(jnp.bfloat16), b.astype(jnp.bfloat16),
                               (((1,), (1,)), ((), ())),
                               preferred_element_type=jnp.float32)

    def masked_softmax(sc, pad_row):
        # masked_fill(pad, -1e9) + softmax, mask applied as one FMA instead of
        # a cmp+select pair.  approx reciprocal rides the EUP slot.
        sc = sc - 1e9 * pad_row
        mx = jnp.max(sc, axis=-1, keepdims=True)
        e = jnp.exp(sc - mx)
        denom = jnp.sum(e, axis=-1, keepdims=True)
        return e * pl.reciprocal(denom, approx=True)

    def stacked_gconv(A_v, A_q, x, wa, ba, wu, bu):
        # Siamese_Gconv for BOTH graphs at once: shared-weight matmuls run on
        # the stacked (Nv+Nq, D) operand (half the MXU pushes, higher sublane
        # occupancy); only the per-graph adjacency matmuls are split.
        ax = jnp.maximum(dot(x, wa) + ba, 0.0)
        ux = jnp.maximum(dot(x, wu) + bu, 0.0)
        out_v = dot(A_v, ax[:Nv]) + ux[:Nv]
        out_q = dot(A_q, ax[Nv:]) + ux[Nv:]
        return jnp.concatenate([out_v, out_q], axis=0)

    # fc1 / fc2, then keep both graphs stacked along the sublane axis (Nv is a
    # multiple of 8, so the row split/concat boundary is sublane-aligned).
    vg = dot(vg_n_ref[0], fc1_w_ref[...]) + fc1_b_ref[...]       # (Nv, D)
    qg = dot(qg_n_ref[0], fc2_w_ref[...]) + fc2_b_ref[...]       # (Nq, D)
    xg = jnp.concatenate([vg, qg], axis=0)                       # (Nv+Nq, D)

    # gnn_layer is a small static constant -> unrolled.
    # TODO(synk): for large L/D switch to lax.fori_loop(..., unroll=True) over
    #             the stacked weight refs (or move L onto the grid) to bound
    #             live ranges and stream per-layer weights.
    for l in range(L):
        ge_wa, ge_ba = ge_wa_ref[l], ge_ba_ref[l]
        ge_wu, ge_bu = ge_wu_ref[l], ge_bu_ref[l]
        ga_wa, ga_ba = ga_wa_ref[l], ga_ba_ref[l]
        ga_wu, ga_bu = ga_wu_ref[l], ga_bu_ref[l]
        sim_A, gma_A = sim_A_ref[l], gma_A_ref[l]
        cg_w, cg_b = cg_w_ref[l], cg_b_ref[l]

        # GE_i (Siamese: weights shared by both graphs)
        xg = stacked_gconv(vg_e, qg_e, xg, ge_wa, ge_ba, ge_wu, ge_bu)

        # SIM_i: per-graph self affinity X @ A @ X^T; the X@A half is batched
        # across the two graphs, the X^T contraction is a dot_general.
        t = dot(xg, sim_A)                       # (Nv+Nq, D)
        vg_A = dot_t(t[:Nv], xg[:Nv])            # (Nv, Nv)
        qg_A = dot_t(t[Nv:], xg[Nv:])            # (Nq, Nq)

        # GA_i (uses the SIM affinities as adjacency)
        xg = stacked_gconv(vg_A, qg_A, xg, ga_wa, ga_ba, ga_wu, ga_bu)

        emb1 = xg[:Nv]                           # (Nv, D)
        emb2 = xg[Nv:]                           # (Nq, D)

        # GMA_i: s = emb1 @ A @ emb2^T computed ONCE; the transposed affinity
        # is an XLU transpose of s (no second MXU pass, exactly s.T).
        xa = dot(emb1, gma_A)                    # (Nv, D)
        s = dot_t(xa, emb2)                      # (Nv, Nq)
        s_t = jnp.transpose(s)                   # (Nq, Nv)

        p1 = masked_softmax(s, qg_pad)           # (Nv, Nq)
        p2 = masked_softmax(s_t, vg_pad)         # (Nq, Nv)

        att1 = dot(p1, emb2)                     # (Nv, D)
        att2 = dot(p2, emb1)                     # (Nq, D)
        att = jnp.concatenate([att1, att2], axis=0)   # (Nv+Nq, D)

        # CG_i: concat([emb, att], -1) @ W  ==  emb@W[:D] + att@W[D:], split on
        # the sublane-aligned K axis, both products on the stacked operand.
        # TODO(synk): at D >= 128 merge along the (lane) output axis instead.
        xg = dot(xg, cg_w[:D, :]) + dot(att, cg_w[D:, :]) + cg_b

    xg_o_ref[0] = xg


# --------------------------- BlockSpec helpers ------------------------------ #

def _full_spec(shape):
    shape = tuple(shape)
    return pl.BlockSpec(shape, lambda b: (0,) * len(shape))


def _batch_spec(tail):
    tail = tuple(tail)
    return pl.BlockSpec((1,) + tail, lambda b: (b,) + (0,) * len(tail))


# ----------------------------- parameter setup ----------------------------- #

def init_params(key, in_dim_g1, in_dim_g2, out_dim, gnn_layer):
    """Weight matrices stored bf16 (native MXU input), biases f32."""
    def lin(k, din, dout, scale=0.1):
        kw, kb = jax.random.split(k)
        w = (scale * jax.random.normal(kw, (din, dout), jnp.float32)).astype(jnp.bfloat16)
        b = scale * jax.random.normal(kb, (1, dout), jnp.float32)
        return w, b

    keys = jax.random.split(key, 2 + gnn_layer)
    fc1_w, fc1_b = lin(keys[0], in_dim_g1, out_dim)
    fc2_w, fc2_b = lin(keys[1], in_dim_g2, out_dim)
    stdv = 1.0 / (float(out_dim) ** 0.5)

    names = ("ge_wa", "ge_ba", "ge_wu", "ge_bu",
             "ga_wa", "ga_ba", "ga_wu", "ga_bu",
             "sim_A", "gma_A", "cg_w", "cg_b")
    per_layer = {n: [] for n in names}
    for i in range(gnn_layer):
        ks = jax.random.split(keys[2 + i], 7)
        ge_wa, ge_ba = lin(ks[0], out_dim, out_dim)
        ge_wu, ge_bu = lin(ks[1], out_dim, out_dim)
        ga_wa, ga_ba = lin(ks[2], out_dim, out_dim)
        ga_wu, ga_bu = lin(ks[3], out_dim, out_dim)
        sim_A = (jnp.eye(out_dim, dtype=jnp.float32)
                 + jax.random.uniform(ks[4], (out_dim, out_dim), jnp.float32, -stdv, stdv)
                 ).astype(jnp.bfloat16)
        gma_A = (jnp.eye(out_dim, dtype=jnp.float32)
                 + jax.random.uniform(ks[5], (out_dim, out_dim), jnp.float32, -stdv, stdv)
                 ).astype(jnp.bfloat16)
        cg_w, cg_b = lin(ks[6], 2 * out_dim, out_dim)
        vals = dict(ge_wa=ge_wa, ge_ba=ge_ba, ge_wu=ge_wu, ge_bu=ge_bu,
                    ga_wa=ga_wa, ga_ba=ga_ba, ga_wu=ga_wu, ga_bu=ga_bu,
                    sim_A=sim_A, gma_A=gma_A, cg_w=cg_w, cg_b=cg_b)
        for n in names:
            per_layer[n].append(vals[n])

    stacked = {n: jnp.stack(per_layer[n], axis=0) for n in names}   # (L, ...)
    return dict(fc1_w=fc1_w, fc1_b=fc1_b, fc2_w=fc2_w, fc2_b=fc2_b,
                gnn_layer=gnn_layer, out_dim=out_dim, **stacked)


# ------------------------------- cost model -------------------------------- #

def _cost_estimate(B, Nv, Nq, in1, in2, D, L, args, out_bytes):
    Nt = Nv + Nq
    fl = 2 * (Nv * in1 * D + Nq * in2 * D)            # fc1 / fc2
    per = 0
    per += 2 * 2 * 2 * Nt * D * D                     # GE+GA Wa/Wu transforms
    per += 2 * 2 * (Nv * Nv * D + Nq * Nq * D)        # GE+GA adjacency matmuls
    per += 2 * Nt * D * D                             # SIM x@A
    per += 2 * (Nv * Nv * D + Nq * Nq * D)            # SIM affinities
    per += 2 * Nv * D * D + 2 * Nv * Nq * D           # GMA
    per += 2 * 2 * Nv * Nq * D                        # attention application
    per += 2 * 2 * Nt * D * D                         # CG
    fl += L * per
    trans = L * (2 * Nv * Nq + Nt)                    # exp + reciprocal
    bytes_accessed = sum(int(a.size) * a.dtype.itemsize for a in args) + out_bytes
    return pl.CostEstimate(flops=B * fl, transcendentals=B * trans,
                           bytes_accessed=int(bytes_accessed))


# ------------------------------- forward pass ------------------------------ #

def graph_match_forward(params, vg_nodes, vg_edges, vg_mask, qg_nodes, qg_edges, qg_mask):
    B, Nv, in1 = vg_nodes.shape
    _, Nq, in2 = qg_nodes.shape
    D = int(params["out_dim"])
    L = int(params["gnn_layer"])
    Nt = Nv + Nq

    vg_mask_f = vg_mask.astype(jnp.float32)   # (B, 1, Nv), 1.0 = padded
    qg_mask_f = qg_mask.astype(jnp.float32)   # (B, 1, Nq), 1.0 = padded

    args = (vg_nodes, qg_nodes, vg_edges, qg_edges, vg_mask_f, qg_mask_f,
            params["fc1_w"], params["fc1_b"], params["fc2_w"], params["fc2_b"],
            params["ge_wa"], params["ge_ba"], params["ge_wu"], params["ge_bu"],
            params["ga_wa"], params["ga_ba"], params["ga_wu"], params["ga_bu"],
            params["sim_A"], params["gma_A"], params["cg_w"], params["cg_b"])

    in_specs = [
        _batch_spec((Nv, in1)),        # vg_nodes
        _batch_spec((Nq, in2)),        # qg_nodes
        _batch_spec((Nv, Nv)),         # vg_edges
        _batch_spec((Nq, Nq)),         # qg_edges
        _batch_spec((1, Nv)),          # vg_mask
        _batch_spec((1, Nq)),          # qg_mask
        _full_spec((in1, D)), _full_spec((1, D)),         # fc1
        _full_spec((in2, D)), _full_spec((1, D)),         # fc2
        _full_spec((L, D, D)), _full_spec((L, 1, D)),     # GE Wa / ba
        _full_spec((L, D, D)), _full_spec((L, 1, D)),     # GE Wu / bu
        _full_spec((L, D, D)), _full_spec((L, 1, D)),     # GA Wa / ba
        _full_spec((L, D, D)), _full_spec((L, 1, D)),     # GA Wu / bu
        _full_spec((L, D, D)),                            # SIM A
        _full_spec((L, D, D)),                            # GMA A
        _full_spec((L, 2 * D, D)), _full_spec((L, 1, D)), # CG W / b
    ]
    # Single packed (lane/sublane-dense) output slab, sliced host-side.
    out_specs = _batch_spec((Nt, D))
    out_shape = jax.ShapeDtypeStruct((B, Nt, D), jnp.float32)
    out_bytes = B * Nt * D * 4

    # Scoped-VMEM budget sized to the real footprint (double-buffered blocks +
    # headroom), clamped to stay inside every generation's physical VMEM.
    batched_bytes = sum(int(a.size) * a.dtype.itemsize // B for a in args[:6])
    weight_bytes = sum(int(a.size) * a.dtype.itemsize for a in args[6:])
    step_bytes = batched_bytes + weight_bytes + Nt * D * 4
    vmem_limit = int(min(max(2 * step_bytes + (8 << 20), 32 << 20), 64 << 20))

    fused = pl.pallas_call(
        _graph_match_kernel,
        out_shape=out_shape,
        grid=(B,),
        in_specs=in_specs,
        out_specs=out_specs,
        compiler_params=pltpu.CompilerParams(
            dimension_semantics=("parallel",),   # v7x: one batch element per TC
            vmem_limit_bytes=vmem_limit),
        cost_estimate=_cost_estimate(B, Nv, Nq, in1, in2, D, L, args, out_bytes),
    )
    xg_out = fused(*args)
    return xg_out[:, :Nv, :], xg_out[:, Nv:, :]


# ---------------------------------- main ----------------------------------- #

if __name__ == "__main__":
    B, Nv, Nq = 2, 16, 8
    in_dim_g1, in_dim_g2, out_dim = 32, 16, 32
    gnn_layer = 2

    key = jax.random.PRNGKey(0)
    kp, kvn, kve, kqn, kqe = jax.random.split(key, 5)

    params = init_params(kp, in_dim_g1, in_dim_g2, out_dim, gnn_layer)

    vg_nodes = jax.random.normal(kvn, (B, Nv, in_dim_g1), jnp.float32)
    qg_nodes = jax.random.normal(kqn, (B, Nq, in_dim_g2), jnp.float32)
    vg_edges = jax.random.uniform(kve, (B, Nv, Nv), jnp.float32)
    qg_edges = jax.random.uniform(kqe, (B, Nq, Nq), jnp.float32)

    # boolean pad masks, True = padded node (broadcast over the query axis)
    vg_len = jnp.array([16, 12])
    qg_len = jnp.array([8, 5])
    vg_mask = (jnp.arange(Nv)[None, :] >= vg_len[:, None])[:, None, :]  # (B,1,Nv)
    qg_mask = (jnp.arange(Nq)[None, :] >= qg_len[:, None])[:, None, :]  # (B,1,Nq)

    vg_out, qg_out = graph_match_forward(
        params, vg_nodes, vg_edges, vg_mask, qg_nodes, qg_edges, qg_mask)
    jax.block_until_ready((vg_out, qg_out))

    assert vg_out.shape == (B, Nv, out_dim) and qg_out.shape == (B, Nq, out_dim)
    assert bool(jnp.all(jnp.isfinite(vg_out))) and bool(jnp.all(jnp.isfinite(qg_out)))
    print("KERNEL_OK")
</pallas_src>

<mosaic_0001>
module attributes {stable_mosaic.version = 11 : i64} {
  func.func @_graph_match_kernel(%arg0: i32, %arg1: memref<1x16x32xf32, #tpu.memory_space<vmem>>, %arg2: memref<1x8x16xf32, #tpu.memory_space<vmem>>, %arg3: memref<1x16x16xf32, #tpu.memory_space<vmem>>, %arg4: memref<1x8x8xf32, #tpu.memory_space<vmem>>, %arg5: memref<1x1x16xf32, #tpu.memory_space<vmem>>, %arg6: memref<1x1x8xf32, #tpu.memory_space<vmem>>, %arg7: memref<32x32xbf16, #tpu.memory_space<vmem>>, %arg8: memref<1x32xf32, #tpu.memory_space<vmem>>, %arg9: memref<16x32xbf16, #tpu.memory_space<vmem>>, %arg10: memref<1x32xf32, #tpu.memory_space<vmem>>, %arg11: memref<2x32x32xbf16, #tpu.memory_space<vmem>>, %arg12: memref<2x1x32xf32, #tpu.memory_space<vmem>>, %arg13: memref<2x32x32xbf16, #tpu.memory_space<vmem>>, %arg14: memref<2x1x32xf32, #tpu.memory_space<vmem>>, %arg15: memref<2x32x32xbf16, #tpu.memory_space<vmem>>, %arg16: memref<2x1x32xf32, #tpu.memory_space<vmem>>, %arg17: memref<2x32x32xbf16, #tpu.memory_space<vmem>>, %arg18: memref<2x1x32xf32, #tpu.memory_space<vmem>>, %arg19: memref<2x32x32xbf16, #tpu.memory_space<vmem>>, %arg20: memref<2x32x32xbf16, #tpu.memory_space<vmem>>, %arg21: memref<2x64x32xbf16, #tpu.memory_space<vmem>>, %arg22: memref<2x1x32xf32, #tpu.memory_space<vmem>>, %arg23: memref<1x24x32xf32, #tpu.memory_space<vmem>>) attributes {dimension_semantics = [#tpu.dimension_semantics<parallel>], iteration_bounds = array<i64: 2>, scalar_prefetch = 0 : i64, scratch_operands = 0 : i64, tpu.core_type = #tpu.core_type<tc>, window_params = [{transform_indices = @transform_0, window_bounds = array<i64: 1, 16, 32>}, {transform_indices = @transform_1, window_bounds = array<i64: 1, 8, 16>}, {transform_indices = @transform_2, window_bounds = array<i64: 1, 16, 16>}, {transform_indices = @transform_3, window_bounds = array<i64: 1, 8, 8>}, {transform_indices = @transform_4, window_bounds = array<i64: 1, 1, 16>}, {transform_indices = @transform_5, window_bounds = array<i64: 1, 1, 8>}, {pipeline_mode = #tpu.pipeline_mode<synchronous>, transform_indices = @transform_6, window_bounds = array<i64: 32, 32>}, {pipeline_mode = #tpu.pipeline_mode<synchronous>, transform_indices = @transform_7, window_bounds = array<i64: 1, 32>}, {pipeline_mode = #tpu.pipeline_mode<synchronous>, transform_indices = @transform_8, window_bounds = array<i64: 16, 32>}, {pipeline_mode = #tpu.pipeline_mode<synchronous>, transform_indices = @transform_9, window_bounds = array<i64: 1, 32>}, {pipeline_mode = #tpu.pipeline_mode<synchronous>, transform_indices = @transform_10, window_bounds = array<i64: 2, 32, 32>}, {pipeline_mode = #tpu.pipeline_mode<synchronous>, transform_indices = @transform_11, window_bounds = array<i64: 2, 1, 32>}, {pipeline_mode = #tpu.pipeline_mode<synchronous>, transform_indices = @transform_12, window_bounds = array<i64: 2, 32, 32>}, {pipeline_mode = #tpu.pipeline_mode<synchronous>, transform_indices = @transform_13, window_bounds = array<i64: 2, 1, 32>}, {pipeline_mode = #tpu.pipeline_mode<synchronous>, transform_indices = @transform_14, window_bounds = array<i64: 2, 32, 32>}, {pipeline_mode = #tpu.pipeline_mode<synchronous>, transform_indices = @transform_15, window_bounds = array<i64: 2, 1, 32>}, {pipeline_mode = #tpu.pipeline_mode<synchronous>, transform_indices = @transform_16, window_bounds = array<i64: 2, 32, 32>}, {pipeline_mode = #tpu.pipeline_mode<synchronous>, transform_indices = @transform_17, window_bounds = array<i64: 2, 1, 32>}, {pipeline_mode = #tpu.pipeline_mode<synchronous>, transform_indices = @transform_18, window_bounds = array<i64: 2, 32, 32>}, {pipeline_mode = #tpu.pipeline_mode<synchronous>, transform_indices = @transform_19, window_bounds = array<i64: 2, 32, 32>}, {pipeline_mode = #tpu.pipeline_mode<synchronous>, transform_indices = @transform_20, window_bounds = array<i64: 2, 64, 32>}, {pipeline_mode = #tpu.pipeline_mode<synchronous>, transform_indices = @transform_21, window_bounds = array<i64: 2, 1, 32>}, {transform_indices = @transform_22, window_bounds = array<i64: 1, 24, 32>}]} {
    %c0 = arith.constant 0 : index
    %c0_0 = arith.constant 0 : index
    %c0_1 = arith.constant 0 : index
    %0 = vector.load %arg3[%c0, %c0_0, %c0_1] : memref<1x16x16xf32, #tpu.memory_space<vmem>>, vector<1x16x16xf32>
    %1 = vector.shape_cast %0 : vector<1x16x16xf32> to vector<16x16xf32>
    %2 = arith.truncf %1 : vector<16x16xf32> to vector<16x16xbf16>
    %c0_2 = arith.constant 0 : index
    %c0_3 = arith.constant 0 : index
    %c0_4 = arith.constant 0 : index
    %3 = vector.load %arg4[%c0_2, %c0_3, %c0_4] : memref<1x8x8xf32, #tpu.memory_space<vmem>>, vector<1x8x8xf32>
    %4 = vector.shape_cast %3 : vector<1x8x8xf32> to vector<8x8xf32>
    %5 = arith.truncf %4 : vector<8x8xf32> to vector<8x8xbf16>
    %c0_5 = arith.constant 0 : index
    %c0_6 = arith.constant 0 : index
    %c0_7 = arith.constant 0 : index
    %6 = vector.load %arg5[%c0_5, %c0_6, %c0_7] : memref<1x1x16xf32, #tpu.memory_space<vmem>>, vector<1x1x16xf32>
    %7 = vector.shape_cast %6 : vector<1x1x16xf32> to vector<1x16xf32>
    %c0_8 = arith.constant 0 : index
    %c0_9 = arith.constant 0 : index
    %c0_10 = arith.constant 0 : index
    %8 = vector.load %arg6[%c0_8, %c0_9, %c0_10] : memref<1x1x8xf32, #tpu.memory_space<vmem>>, vector<1x1x8xf32>
    %9 = vector.shape_cast %8 : vector<1x1x8xf32> to vector<1x8xf32>
    %c0_11 = arith.constant 0 : index
    %c0_12 = arith.constant 0 : index
    %c0_13 = arith.constant 0 : index
    %10 = vector.load %arg1[%c0_11, %c0_12, %c0_13] : memref<1x16x32xf32, #tpu.memory_space<vmem>>, vector<1x16x32xf32>
    %11 = vector.shape_cast %10 : vector<1x16x32xf32> to vector<16x32xf32>
    %c0_14 = arith.constant 0 : index
    %c0_15 = arith.constant 0 : index
    %12 = vector.load %arg7[%c0_14, %c0_15] : memref<32x32xbf16, #tpu.memory_space<vmem>>, vector<32x32xbf16>
    %13 = arith.truncf %11 : vector<16x32xf32> to vector<16x32xbf16>
    %cst = arith.constant dense<0.000000e+00> : vector<16x32xf32>
    %14 = tpu.matmul %13, %12, %cst {dimension_numbers = #tpu.dot_dimension_numbers<[1], [0], [0], [1], [0, 0, 1, 1], [], []>} : vector<16x32xbf16>, vector<32x32xbf16>, vector<16x32xf32> -> vector<16x32xf32>
    %c0_16 = arith.constant 0 : index
    %c0_17 = arith.constant 0 : index
    %15 = vector.load %arg8[%c0_16, %c0_17] : memref<1x32xf32, #tpu.memory_space<vmem>>, vector<1x32xf32>
    %16 = vector.broadcast %15 : vector<1x32xf32> to vector<16x32xf32>
    %17 = arith.addf %14, %16 : vector<16x32xf32>
    %c0_18 = arith.constant 0 : index
    %c0_19 = arith.constant 0 : index
    %c0_20 = arith.constant 0 : index
    %18 = vector.load %arg2[%c0_18, %c0_19, %c0_20] : memref<1x8x16xf32, #tpu.memory_space<vmem>>, vector<1x8x16xf32>
    %19 = vector.shape_cast %18 : vector<1x8x16xf32> to vector<8x16xf32>
    %c0_21 = arith.constant 0 : index
    %c0_22 = arith.constant 0 : index
    %20 = vector.load %arg9[%c0_21, %c0_22] : memref<16x32xbf16, #tpu.memory_space<vmem>>, vector<16x32xbf16>
    %21 = arith.truncf %19 : vector<8x16xf32> to vector<8x16xbf16>
    %cst_23 = arith.constant dense<0.000000e+00> : vector<8x32xf32>
    %22 = tpu.matmul %21, %20, %cst_23 {dimension_numbers = #tpu.dot_dimension_numbers<[1], [0], [0], [1], [0, 0, 1, 1], [], []>} : vector<8x16xbf16>, vector<16x32xbf16>, vector<8x32xf32> -> vector<8x32xf32>
    %c0_24 = arith.constant 0 : index
    %c0_25 = arith.constant 0 : index
    %23 = vector.load %arg10[%c0_24, %c0_25] : memref<1x32xf32, #tpu.memory_space<vmem>>, vector<1x32xf32>
    %24 = vector.broadcast %23 : vector<1x32xf32> to vector<8x32xf32>
    %25 = arith.addf %22, %24 : vector<8x32xf32>
    %26 = tpu.concatenate %17, %25 in 0 : vector<16x32xf32>, vector<8x32xf32> -> vector<24x32xf32>
    %c0_26 = arith.constant 0 : index
    %c0_27 = arith.constant 0 : index
    %c0_28 = arith.constant 0 : index
    %27 = vector.load %arg11[%c0_26, %c0_27, %c0_28] : memref<2x32x32xbf16, #tpu.memory_space<vmem>>, vector<1x32x32xbf16>
    %28 = vector.shape_cast %27 : vector<1x32x32xbf16> to vector<32x32xbf16>
    %c0_29 = arith.constant 0 : index
    %c0_30 = arith.constant 0 : index
    %c0_31 = arith.constant 0 : index
    %29 = vector.load %arg12[%c0_29, %c0_30, %c0_31] : memref<2x1x32xf32, #tpu.memory_space<vmem>>, vector<1x1x32xf32>
    %30 = vector.shape_cast %29 : vector<1x1x32xf32> to vector<1x32xf32>
    %c0_32 = arith.constant 0 : index
    %c0_33 = arith.constant 0 : index
    %c0_34 = arith.constant 0 : index
    %31 = vector.load %arg13[%c0_32, %c0_33, %c0_34] : memref<2x32x32xbf16, #tpu.memory_space<vmem>>, vector<1x32x32xbf16>
    %32 = vector.shape_cast %31 : vector<1x32x32xbf16> to vector<32x32xbf16>
    %c0_35 = arith.constant 0 : index
    %c0_36 = arith.constant 0 : index
    %c0_37 = arith.constant 0 : index
    %33 = vector.load %arg14[%c0_35, %c0_36, %c0_37] : memref<2x1x32xf32, #tpu.memory_space<vmem>>, vector<1x1x32xf32>
    %34 = vector.shape_cast %33 : vector<1x1x32xf32> to vector<1x32xf32>
    %c0_38 = arith.constant 0 : index
    %c0_39 = arith.constant 0 : index
    %c0_40 = arith.constant 0 : index
    %35 = vector.load %arg15[%c0_38, %c0_39, %c0_40] : memref<2x32x32xbf16, #tpu.memory_space<vmem>>, vector<1x32x32xbf16>
    %36 = vector.shape_cast %35 : vector<1x32x32xbf16> to vector<32x32xbf16>
    %c0_41 = arith.constant 0 : index
    %c0_42 = arith.constant 0 : index
    %c0_43 = arith.constant 0 : index
    %37 = vector.load %arg16[%c0_41, %c0_42, %c0_43] : memref<2x1x32xf32, #tpu.memory_space<vmem>>, vector<1x1x32xf32>
    %38 = vector.shape_cast %37 : vector<1x1x32xf32> to vector<1x32xf32>
    %c0_44 = arith.constant 0 : index
    %c0_45 = arith.constant 0 : index
    %c0_46 = arith.constant 0 : index
    %39 = vector.load %arg17[%c0_44, %c0_45, %c0_46] : memref<2x32x32xbf16, #tpu.memory_space<vmem>>, vector<1x32x32xbf16>
    %40 = vector.shape_cast %39 : vector<1x32x32xbf16> to vector<32x32xbf16>
    %c0_47 = arith.constant 0 : index
    %c0_48 = arith.constant 0 : index
    %c0_49 = arith.constant 0 : index
    %41 = vector.load %arg18[%c0_47, %c0_48, %c0_49] : memref<2x1x32xf32, #tpu.memory_space<vmem>>, vector<1x1x32xf32>
    %42 = vector.shape_cast %41 : vector<1x1x32xf32> to vector<1x32xf32>
    %c0_50 = arith.constant 0 : index
    %c0_51 = arith.constant 0 : index
    %c0_52 = arith.constant 0 : index
    %43 = vector.load %arg19[%c0_50, %c0_51, %c0_52] : memref<2x32x32xbf16, #tpu.memory_space<vmem>>, vector<1x32x32xbf16>
    %44 = vector.shape_cast %43 : vector<1x32x32xbf16> to vector<32x32xbf16>
    %c0_53 = arith.constant 0 : index
    %c0_54 = arith.constant 0 : index
    %c0_55 = arith.constant 0 : index
    %45 = vector.load %arg20[%c0_53, %c0_54, %c0_55] : memref<2x32x32xbf16, #tpu.memory_space<vmem>>, vector<1x32x32xbf16>
    %46 = vector.shape_cast %45 : vector<1x32x32xbf16> to vector<32x32xbf16>
    %c0_56 = arith.constant 0 : index
    %c0_57 = arith.constant 0 : index
    %c0_58 = arith.constant 0 : index
    %47 = vector.load %arg21[%c0_56, %c0_57, %c0_58] : memref<2x64x32xbf16, #tpu.memory_space<vmem>>, vector<1x64x32xbf16>
    %48 = vector.shape_cast %47 : vector<1x64x32xbf16> to vector<64x32xbf16>
    %c0_59 = arith.constant 0 : index
    %c0_60 = arith.constant 0 : index
    %c0_61 = arith.constant 0 : index
    %49 = vector.load %arg22[%c0_59, %c0_60, %c0_61] : memref<2x1x32xf32, #tpu.memory_space<vmem>>, vector<1x1x32xf32>
    %50 = vector.shape_cast %49 : vector<1x1x32xf32> to vector<1x32xf32>
    %51 = arith.truncf %26 : vector<24x32xf32> to vector<24x32xbf16>
    %cst_62 = arith.constant dense<0.000000e+00> : vector<24x32xf32>
    %52 = tpu.matmul %51, %28, %cst_62 {dimension_numbers = #tpu.dot_dimension_numbers<[1], [0], [0], [1], [0, 0, 1, 1], [], []>} : vector<24x32xbf16>, vector<32x32xbf16>, vector<24x32xf32> -> vector<24x32xf32>
    %53 = vector.broadcast %30 : vector<1x32xf32> to vector<24x32xf32>
    %54 = arith.addf %52, %53 : vector<24x32xf32>
    %cst_63 = arith.constant 0.000000e+00 : f32
    %55 = vector.broadcast %cst_63 : f32 to vector<24x32xf32>
    %56 = arith.maximumf %54, %55 : vector<24x32xf32>
    %57 = arith.truncf %26 : vector<24x32xf32> to vector<24x32xbf16>
    %cst_64 = arith.constant dense<0.000000e+00> : vector<24x32xf32>
    %58 = tpu.matmul %57, %32, %cst_64 {dimension_numbers = #tpu.dot_dimension_numbers<[1], [0], [0], [1], [0, 0, 1, 1], [], []>} : vector<24x32xbf16>, vector<32x32xbf16>, vector<24x32xf32> -> vector<24x32xf32>
    %59 = vector.broadcast %34 : vector<1x32xf32> to vector<24x32xf32>
    %60 = arith.addf %58, %59 : vector<24x32xf32>
    %cst_65 = arith.constant 0.000000e+00 : f32
    %61 = vector.broadcast %cst_65 : f32 to vector<24x32xf32>
    %62 = arith.maximumf %60, %61 : vector<24x32xf32>
    %63 = vector.extract_strided_slice %56 {offsets = [0, 0], sizes = [16, 32], strides = [1, 1]} : vector<24x32xf32> to vector<16x32xf32>
    %64 = arith.truncf %63 : vector<16x32xf32> to vector<16x32xbf16>
    %cst_66 = arith.constant dense<0.000000e+00> : vector<16x32xf32>
    %65 = tpu.matmul %2, %64, %cst_66 {dimension_numbers = #tpu.dot_dimension_numbers<[1], [0], [0], [1], [0, 0, 1, 1], [], []>} : vector<16x16xbf16>, vector<16x32xbf16>, vector<16x32xf32> -> vector<16x32xf32>
    %66 = vector.extract_strided_slice %62 {offsets = [0, 0], sizes = [16, 32], strides = [1, 1]} : vector<24x32xf32> to vector<16x32xf32>
    %67 = arith.addf %65, %66 : vector<16x32xf32>
    %68 = vector.extract_strided_slice %56 {offsets = [16, 0], sizes = [8, 32], strides = [1, 1]} : vector<24x32xf32> to vector<8x32xf32>
    %69 = arith.truncf %68 : vector<8x32xf32> to vector<8x32xbf16>
    %cst_67 = arith.constant dense<0.000000e+00> : vector<8x32xf32>
    %70 = tpu.matmul %5, %69, %cst_67 {dimension_numbers = #tpu.dot_dimension_numbers<[1], [0], [0], [1], [0, 0, 1, 1], [], []>} : vector<8x8xbf16>, vector<8x32xbf16>, vector<8x32xf32> -> vector<8x32xf32>
    %71 = vector.extract_strided_slice %62 {offsets = [16, 0], sizes = [8, 32], strides = [1, 1]} : vector<24x32xf32> to vector<8x32xf32>
    %72 = arith.addf %70, %71 : vector<8x32xf32>
    %73 = tpu.concatenate %67, %72 in 0 : vector<16x32xf32>, vector<8x32xf32> -> vector<24x32xf32>
    %74 = arith.truncf %73 : vector<24x32xf32> to vector<24x32xbf16>
    %cst_68 = arith.constant dense<0.000000e+00> : vector<24x32xf32>
    %75 = tpu.matmul %74, %44, %cst_68 {dimension_numbers = #tpu.dot_dimension_numbers<[1], [0], [0], [1], [0, 0, 1, 1], [], []>} : vector<24x32xbf16>, vector<32x32xbf16>, vector<24x32xf32> -> vector<24x32xf32>
    %76 = vector.extract_strided_slice %75 {offsets = [0, 0], sizes = [16, 32], strides = [1, 1]} : vector<24x32xf32> to vector<16x32xf32>
    %77 = vector.extract_strided_slice %73 {offsets = [0, 0], sizes = [16, 32], strides = [1, 1]} : vector<24x32xf32> to vector<16x32xf32>
    %78 = arith.truncf %76 : vector<16x32xf32> to vector<16x32xbf16>
    %79 = arith.truncf %77 : vector<16x32xf32> to vector<16x32xbf16>
    %cst_69 = arith.constant dense<0.000000e+00> : vector<16x16xf32>
    %80 = tpu.matmul %78, %79, %cst_69 {dimension_numbers = #tpu.dot_dimension_numbers<[1], [1], [0], [0], [0, 0, 1, 0], [], []>} : vector<16x32xbf16>, vector<16x32xbf16>, vector<16x16xf32> -> vector<16x16xf32>
    %81 = vector.extract_strided_slice %75 {offsets = [16, 0], sizes = [8, 32], strides = [1, 1]} : vector<24x32xf32> to vector<8x32xf32>
    %82 = vector.extract_strided_slice %73 {offsets = [16, 0], sizes = [8, 32], strides = [1, 1]} : vector<24x32xf32> to vector<8x32xf32>
    %83 = arith.truncf %81 : vector<8x32xf32> to vector<8x32xbf16>
    %84 = arith.truncf %82 : vector<8x32xf32> to vector<8x32xbf16>
    %cst_70 = arith.constant dense<0.000000e+00> : vector<8x8xf32>
    %85 = tpu.matmul %83, %84, %cst_70 {dimension_numbers = #tpu.dot_dimension_numbers<[1], [1], [0], [0], [0, 0, 1, 0], [], []>} : vector<8x32xbf16>, vector<8x32xbf16>, vector<8x8xf32> -> vector<8x8xf32>
    %86 = arith.truncf %73 : vector<24x32xf32> to vector<24x32xbf16>
    %cst_71 = arith.constant dense<0.000000e+00> : vector<24x32xf32>
    %87 = tpu.matmul %86, %36, %cst_71 {dimension_numbers = #tpu.dot_dimension_numbers<[1], [0], [0], [1], [0, 0, 1, 1], [], []>} : vector<24x32xbf16>, vector<32x32xbf16>, vector<24x32xf32> -> vector<24x32xf32>
    %88 = vector.broadcast %38 : vector<1x32xf32> to vector<24x32xf32>
    %89 = arith.addf %87, %88 : vector<24x32xf32>
    %cst_72 = arith.constant 0.000000e+00 : f32
    %90 = vector.broadcast %cst_72 : f32 to vector<24x32xf32>
    %91 = arith.maximumf %89, %90 : vector<24x32xf32>
    %92 = arith.truncf %73 : vector<24x32xf32> to vector<24x32xbf16>
    %cst_73 = arith.constant dense<0.000000e+00> : vector<24x32xf32>
    %93 = tpu.matmul %92, %40, %cst_73 {dimension_numbers = #tpu.dot_dimension_numbers<[1], [0], [0], [1], [0, 0, 1, 1], [], []>} : vector<24x32xbf16>, vector<32x32xbf16>, vector<24x32xf32> -> vector<24x32xf32>
    %94 = vector.broadcast %42 : vector<1x32xf32> to vector<24x32xf32>
    %95 = arith.addf %93, %94 : vector<24x32xf32>
    %cst_74 = arith.constant 0.000000e+00 : f32
    %96 = vector.broadcast %cst_74 : f32 to vector<24x32xf32>
    %97 = arith.maximumf %95, %96 : vector<24x32xf32>
    %98 = vector.extract_strided_slice %91 {offsets = [0, 0], sizes = [16, 32], strides = [1, 1]} : vector<24x32xf32> to vector<16x32xf32>
    %99 = arith.truncf %80 : vector<16x16xf32> to vector<16x16xbf16>
    %100 = arith.truncf %98 : vector<16x32xf32> to vector<16x32xbf16>
    %cst_75 = arith.constant dense<0.000000e+00> : vector<16x32xf32>
    %101 = tpu.matmul %99, %100, %cst_75 {dimension_numbers = #tpu.dot_dimension_numbers<[1], [0], [0], [1], [0, 0, 1, 1], [], []>} : vector<16x16xbf16>, vector<16x32xbf16>, vector<16x32xf32> -> vector<16x32xf32>
    %102 = vector.extract_strided_slice %97 {offsets = [0, 0], sizes = [16, 32], strides = [1, 1]} : vector<24x32xf32> to vector<16x32xf32>
    %103 = arith.addf %101, %102 : vector<16x32xf32>
    %104 = vector.extract_strided_slice %91 {offsets = [16, 0], sizes = [8, 32], strides = [1, 1]} : vector<24x32xf32> to vector<8x32xf32>
    %105 = arith.truncf %85 : vector<8x8xf32> to vector<8x8xbf16>
    %106 = arith.truncf %104 : vector<8x32xf32> to vector<8x32xbf16>
    %cst_76 = arith.constant dense<0.000000e+00> : vector<8x32xf32>
    %107 = tpu.matmul %105, %106, %cst_76 {dimension_numbers = #tpu.dot_dimension_numbers<[1], [0], [0], [1], [0, 0, 1, 1], [], []>} : vector<8x8xbf16>, vector<8x32xbf16>, vector<8x32xf32> -> vector<8x32xf32>
    %108 = vector.extract_strided_slice %97 {offsets = [16, 0], sizes = [8, 32], strides = [1, 1]} : vector<24x32xf32> to vector<8x32xf32>
    %109 = arith.addf %107, %108 : vector<8x32xf32>
    %110 = tpu.concatenate %103, %109 in 0 : vector<16x32xf32>, vector<8x32xf32> -> vector<24x32xf32>
    %111 = vector.extract_strided_slice %110 {offsets = [0, 0], sizes = [16, 32], strides = [1, 1]} : vector<24x32xf32> to vector<16x32xf32>
    %112 = vector.extract_strided_slice %110 {offsets = [16, 0], sizes = [8, 32], strides = [1, 1]} : vector<24x32xf32> to vector<8x32xf32>
    %113 = arith.truncf %111 : vector<16x32xf32> to vector<16x32xbf16>
    %cst_77 = arith.constant dense<0.000000e+00> : vector<16x32xf32>
    %114 = tpu.matmul %113, %46, %cst_77 {dimension_numbers = #tpu.dot_dimension_numbers<[1], [0], [0], [1], [0, 0, 1, 1], [], []>} : vector<16x32xbf16>, vector<32x32xbf16>, vector<16x32xf32> -> vector<16x32xf32>
    %115 = arith.truncf %114 : vector<16x32xf32> to vector<16x32xbf16>
    %116 = arith.truncf %112 : vector<8x32xf32> to vector<8x32xbf16>
    %cst_78 = arith.constant dense<0.000000e+00> : vector<16x8xf32>
    %117 = tpu.matmul %115, %116, %cst_78 {dimension_numbers = #tpu.dot_dimension_numbers<[1], [1], [0], [0], [0, 0, 1, 0], [], []>} : vector<16x32xbf16>, vector<8x32xbf16>, vector<16x8xf32> -> vector<16x8xf32>
    %118 = tpu.transpose %117, [1, 0] : vector<16x8xf32> -> vector<8x16xf32>
    %cst_79 = arith.constant 1.000000e+09 : f32
    %119 = vector.broadcast %cst_79 : f32 to vector<1x8xf32>
    %120 = arith.mulf %119, %9 : vector<1x8xf32>
    %121 = vector.broadcast %120 : vector<1x8xf32> to vector<16x8xf32>
    %122 = arith.subf %117, %121 : vector<16x8xf32>
    %cst_80 = arith.constant dense<0xFF800000> : vector<16xf32>
    %123 = vector.multi_reduction <maximumf>, %122, %cst_80 [1] : vector<16x8xf32> to vector<16xf32>
    %124 = vector.shape_cast %123 : vector<16xf32> to vector<16x1xf32>
    %125 = vector.broadcast %124 : vector<16x1xf32> to vector<16x8xf32>
    %126 = arith.subf %122, %125 : vector<16x8xf32>
    %127 = math.exp %126 : vector<16x8xf32>
    %cst_81 = arith.constant dense<0.000000e+00> : vector<16xf32>
    %128 = vector.multi_reduction <add>, %127, %cst_81 [1] : vector<16x8xf32> to vector<16xf32>
    %129 = vector.shape_cast %128 : vector<16xf32> to vector<16x1xf32>
    %130 = tpu.reciprocal %129 {approx = true} : vector<16x1xf32> -> vector<16x1xf32>
    %131 = vector.broadcast %130 : vector<16x1xf32> to vector<16x8xf32>
    %132 = arith.mulf %127, %131 : vector<16x8xf32>
    %cst_82 = arith.constant 1.000000e+09 : f32
    %133 = vector.broadcast %cst_82 : f32 to vector<1x16xf32>
    %134 = arith.mulf %133, %7 : vector<1x16xf32>
    %135 = vector.broadcast %134 : vector<1x16xf32> to vector<8x16xf32>
    %136 = arith.subf %118, %135 : vector<8x16xf32>
    %cst_83 = arith.constant dense<0xFF800000> : vector<8xf32>
    %137 = vector.multi_reduction <maximumf>, %136, %cst_83 [1] : vector<8x16xf32> to vector<8xf32>
    %138 = vector.shape_cast %137 : vector<8xf32> to vector<8x1xf32>
    %139 = vector.broadcast %138 : vector<8x1xf32> to vector<8x16xf32>
    %140 = arith.subf %136, %139 : vector<8x16xf32>
    %141 = math.exp %140 : vector<8x16xf32>
    %cst_84 = arith.constant dense<0.000000e+00> : vector<8xf32>
    %142 = vector.multi_reduction <add>, %141, %cst_84 [1] : vector<8x16xf32> to vector<8xf32>
    %143 = vector.shape_cast %142 : vector<8xf32> to vector<8x1xf32>
    %144 = tpu.reciprocal %143 {approx = true} : vector<8x1xf32> -> vector<8x1xf32>
    %145 = vector.broadcast %144 : vector<8x1xf32> to vector<8x16xf32>
    %146 = arith.mulf %141, %145 : vector<8x16xf32>
    %147 = arith.truncf %132 : vector<16x8xf32> to vector<16x8xbf16>
    %148 = arith.truncf %112 : vector<8x32xf32> to vector<8x32xbf16>
    %cst_85 = arith.constant dense<0.000000e+00> : vector<16x32xf32>
    %149 = tpu.matmul %147, %148, %cst_85 {dimension_numbers = #tpu.dot_dimension_numbers<[1], [0], [0], [1], [0, 0, 1, 1], [], []>} : vector<16x8xbf16>, vector<8x32xbf16>, vector<16x32xf32> -> vector<16x32xf32>
    %150 = arith.truncf %146 : vector<8x16xf32> to vector<8x16xbf16>
    %151 = arith.truncf %111 : vector<16x32xf32> to vector<16x32xbf16>
    %cst_86 = arith.constant dense<0.000000e+00> : vector<8x32xf32>
    %152 = tpu.matmul %150, %151, %cst_86 {dimension_numbers = #tpu.dot_dimension_numbers<[1], [0], [0], [1], [0, 0, 1, 1], [], []>} : vector<8x16xbf16>, vector<16x32xbf16>, vector<8x32xf32> -> vector<8x32xf32>
    %153 = tpu.concatenate %149, %152 in 0 : vector<16x32xf32>, vector<8x32xf32> -> vector<24x32xf32>
    %154 = vector.extract_strided_slice %48 {offsets = [0, 0], sizes = [32, 32], strides = [1, 1]} : vector<64x32xbf16> to vector<32x32xbf16>
    %155 = arith.truncf %110 : vector<24x32xf32> to vector<24x32xbf16>
    %cst_87 = arith.constant dense<0.000000e+00> : vector<24x32xf32>
    %156 = tpu.matmul %155, %154, %cst_87 {dimension_numbers = #tpu.dot_dimension_numbers<[1], [0], [0], [1], [0, 0, 1, 1], [], []>} : vector<24x32xbf16>, vector<32x32xbf16>, vector<24x32xf32> -> vector<24x32xf32>
    %157 = vector.extract_strided_slice %48 {offsets = [32, 0], sizes = [32, 32], strides = [1, 1]} : vector<64x32xbf16> to vector<32x32xbf16>
    %158 = arith.truncf %153 : vector<24x32xf32> to vector<24x32xbf16>
    %cst_88 = arith.constant dense<0.000000e+00> : vector<24x32xf32>
    %159 = tpu.matmul %158, %157, %cst_88 {dimension_numbers = #tpu.dot_dimension_numbers<[1], [0], [0], [1], [0, 0, 1, 1], [], []>} : vector<24x32xbf16>, vector<32x32xbf16>, vector<24x32xf32> -> vector<24x32xf32>
    %160 = arith.addf %156, %159 : vector<24x32xf32>
    %161 = vector.broadcast %50 : vector<1x32xf32> to vector<24x32xf32>
    %162 = arith.addf %160, %161 : vector<24x32xf32>
    %c1 = arith.constant 1 : index
    %c0_89 = arith.constant 0 : index
    %c0_90 = arith.constant 0 : index
    %163 = vector.load %arg11[%c1, %c0_89, %c0_90] : memref<2x32x32xbf16, #tpu.memory_space<vmem>>, vector<1x32x32xbf16>
    %164 = vector.shape_cast %163 : vector<1x32x32xbf16> to vector<32x32xbf16>
    %c1_91 = arith.constant 1 : index
    %c0_92 = arith.constant 0 : index
    %c0_93 = arith.constant 0 : index
    %165 = vector.load %arg12[%c1_91, %c0_92, %c0_93] : memref<2x1x32xf32, #tpu.memory_space<vmem>>, vector<1x1x32xf32>
    %166 = vector.shape_cast %165 : vector<1x1x32xf32> to vector<1x32xf32>
    %c1_94 = arith.constant 1 : index
    %c0_95 = arith.constant 0 : index
    %c0_96 = arith.constant 0 : index
    %167 = vector.load %arg13[%c1_94, %c0_95, %c0_96] : memref<2x32x32xbf16, #tpu.memory_space<vmem>>, vector<1x32x32xbf16>
    %168 = vector.shape_cast %167 : vector<1x32x32xbf16> to vector<32x32xbf16>
    %c1_97 = arith.constant 1 : index
    %c0_98 = arith.constant 0 : index
    %c0_99 = arith.constant 0 : index
    %169 = vector.load %arg14[%c1_97, %c0_98, %c0_99] : memref<2x1x32xf32, #tpu.memory_space<vmem>>, vector<1x1x32xf32>
    %170 = vector.shape_cast %169 : vector<1x1x32xf32> to vector<1x32xf32>
    %c1_100 = arith.constant 1 : index
    %c0_101 = arith.constant 0 : index
    %c0_102 = arith.constant 0 : index
    %171 = vector.load %arg15[%c1_100, %c0_101, %c0_102] : memref<2x32x32xbf16, #tpu.memory_space<vmem>>, vector<1x32x32xbf16>
    %172 = vector.shape_cast %171 : vector<1x32x32xbf16> to vector<32x32xbf16>
    %c1_103 = arith.constant 1 : index
    %c0_104 = arith.constant 0 : index
    %c0_105 = arith.constant 0 : index
    %173 = vector.load %arg16[%c1_103, %c0_104, %c0_105] : memref<2x1x32xf32, #tpu.memory_space<vmem>>, vector<1x1x32xf32>
    %174 = vector.shape_cast %173 : vector<1x1x32xf32> to vector<1x32xf32>
    %c1_106 = arith.constant 1 : index
    %c0_107 = arith.constant 0 : index
    %c0_108 = arith.constant 0 : index
    %175 = vector.load %arg17[%c1_106, %c0_107, %c0_108] : memref<2x32x32xbf16, #tpu.memory_space<vmem>>, vector<1x32x32xbf16>
    %176 = vector.shape_cast %175 : vector<1x32x32xbf16> to vector<32x32xbf16>
    %c1_109 = arith.constant 1 : index
    %c0_110 = arith.constant 0 : index
    %c0_111 = arith.constant 0 : index
    %177 = vector.load %arg18[%c1_109, %c0_110, %c0_111] : memref<2x1x32xf32, #tpu.memory_space<vmem>>, vector<1x1x32xf32>
    %178 = vector.shape_cast %177 : vector<1x1x32xf32> to vector<1x32xf32>
    %c1_112 = arith.constant 1 : index
    %c0_113 = arith.constant 0 : index
    %c0_114 = arith.constant 0 : index
    %179 = vector.load %arg19[%c1_112, %c0_113, %c0_114] : memref<2x32x32xbf16, #tpu.memory_space<vmem>>, vector<1x32x32xbf16>
    %180 = vector.shape_cast %179 : vector<1x32x32xbf16> to vector<32x32xbf16>
    %c1_115 = arith.constant 1 : index
    %c0_116 = arith.constant 0 : index
    %c0_117 = arith.constant 0 : index
    %181 = vector.load %arg20[%c1_115, %c0_116, %c0_117] : memref<2x32x32xbf16, #tpu.memory_space<vmem>>, vector<1x32x32xbf16>
    %182 = vector.shape_cast %181 : vector<1x32x32xbf16> to vector<32x32xbf16>
    %c1_118 = arith.constant 1 : index
    %c0_119 = arith.constant 0 : index
    %c0_120 = arith.constant 0 : index
    %183 = vector.load %arg21[%c1_118, %c0_119, %c0_120] : memref<2x64x32xbf16, #tpu.memory_space<vmem>>, vector<1x64x32xbf16>
    %184 = vector.shape_cast %183 : vector<1x64x32xbf16> to vector<64x32xbf16>
    %c1_121 = arith.constant 1 : index
    %c0_122 = arith.constant 0 : index
    %c0_123 = arith.constant 0 : index
    %185 = vector.load %arg22[%c1_121, %c0_122, %c0_123] : memref<2x1x32xf32, #tpu.memory_space<vmem>>, vector<1x1x32xf32>
    %186 = vector.shape_cast %185 : vector<1x1x32xf32> to vector<1x32xf32>
    %187 = arith.truncf %162 : vector<24x32xf32> to vector<24x32xbf16>
    %cst_124 = arith.constant dense<0.000000e+00> : vector<24x32xf32>
    %188 = tpu.matmul %187, %164, %cst_124 {dimension_numbers = #tpu.dot_dimension_numbers<[1], [0], [0], [1], [0, 0, 1, 1], [], []>} : vector<24x32xbf16>, vector<32x32xbf16>, vector<24x32xf32> -> vector<24x32xf32>
    %189 = vector.broadcast %166 : vector<1x32xf32> to vector<24x32xf32>
    %190 = arith.addf %188, %189 : vector<24x32xf32>
    %cst_125 = arith.constant 0.000000e+00 : f32
    %191 = vector.broadcast %cst_125 : f32 to vector<24x32xf32>
    %192 = arith.maximumf %190, %191 : vector<24x32xf32>
    %193 = arith.truncf %162 : vector<24x32xf32> to vector<24x32xbf16>
    %cst_126 = arith.constant dense<0.000000e+00> : vector<24x32xf32>
    %194 = tpu.matmul %193, %168, %cst_126 {dimension_numbers = #tpu.dot_dimension_numbers<[1], [0], [0], [1], [0, 0, 1, 1], [], []>} : vector<24x32xbf16>, vector<32x32xbf16>, vector<24x32xf32> -> vector<24x32xf32>
    %195 = vector.broadcast %170 : vector<1x32xf32> to vector<24x32xf32>
    %196 = arith.addf %194, %195 : vector<24x32xf32>
    %cst_127 = arith.constant 0.000000e+00 : f32
    %197 = vector.broadcast %cst_127 : f32 to vector<24x32xf32>
    %198 = arith.maximumf %196, %197 : vector<24x32xf32>
    %199 = vector.extract_strided_slice %192 {offsets = [0, 0], sizes = [16, 32], strides = [1, 1]} : vector<24x32xf32> to vector<16x32xf32>
    %200 = arith.truncf %199 : vector<16x32xf32> to vector<16x32xbf16>
    %cst_128 = arith.constant dense<0.000000e+00> : vector<16x32xf32>
    %201 = tpu.matmul %2, %200, %cst_128 {dimension_numbers = #tpu.dot_dimension_numbers<[1], [0], [0], [1], [0, 0, 1, 1], [], []>} : vector<16x16xbf16>, vector<16x32xbf16>, vector<16x32xf32> -> vector<16x32xf32>
    %202 = vector.extract_strided_slice %198 {offsets = [0, 0], sizes = [16, 32], strides = [1, 1]} : vector<24x32xf32> to vector<16x32xf32>
    %203 = arith.addf %201, %202 : vector<16x32xf32>
    %204 = vector.extract_strided_slice %192 {offsets = [16, 0], sizes = [8, 32], strides = [1, 1]} : vector<24x32xf32> to vector<8x32xf32>
    %205 = arith.truncf %204 : vector<8x32xf32> to vector<8x32xbf16>
    %cst_129 = arith.constant dense<0.000000e+00> : vector<8x32xf32>
    %206 = tpu.matmul %5, %205, %cst_129 {dimension_numbers = #tpu.dot_dimension_numbers<[1], [0], [0], [1], [0, 0, 1, 1], [], []>} : vector<8x8xbf16>, vector<8x32xbf16>, vector<8x32xf32> -> vector<8x32xf32>
    %207 = vector.extract_strided_slice %198 {offsets = [16, 0], sizes = [8, 32], strides = [1, 1]} : vector<24x32xf32> to vector<8x32xf32>
    %208 = arith.addf %206, %207 : vector<8x32xf32>
    %209 = tpu.concatenate %203, %208 in 0 : vector<16x32xf32>, vector<8x32xf32> -> vector<24x32xf32>
    %210 = arith.truncf %209 : vector<24x32xf32> to vector<24x32xbf16>
    %cst_130 = arith.constant dense<0.000000e+00> : vector<24x32xf32>
    %211 = tpu.matmul %210, %180, %cst_130 {dimension_numbers = #tpu.dot_dimension_numbers<[1], [0], [0], [1], [0, 0, 1, 1], [], []>} : vector<24x32xbf16>, vector<32x32xbf16>, vector<24x32xf32> -> vector<24x32xf32>
    %212 = vector.extract_strided_slice %211 {offsets = [0, 0], sizes = [16, 32], strides = [1, 1]} : vector<24x32xf32> to vector<16x32xf32>
    %213 = vector.extract_strided_slice %209 {offsets = [0, 0], sizes = [16, 32], strides = [1, 1]} : vector<24x32xf32> to vector<16x32xf32>
    %214 = arith.truncf %212 : vector<16x32xf32> to vector<16x32xbf16>
    %215 = arith.truncf %213 : vector<16x32xf32> to vector<16x32xbf16>
    %cst_131 = arith.constant dense<0.000000e+00> : vector<16x16xf32>
    %216 = tpu.matmul %214, %215, %cst_131 {dimension_numbers = #tpu.dot_dimension_numbers<[1], [1], [0], [0], [0, 0, 1, 0], [], []>} : vector<16x32xbf16>, vector<16x32xbf16>, vector<16x16xf32> -> vector<16x16xf32>
    %217 = vector.extract_strided_slice %211 {offsets = [16, 0], sizes = [8, 32], strides = [1, 1]} : vector<24x32xf32> to vector<8x32xf32>
    %218 = vector.extract_strided_slice %209 {offsets = [16, 0], sizes = [8, 32], strides = [1, 1]} : vector<24x32xf32> to vector<8x32xf32>
    %219 = arith.truncf %217 : vector<8x32xf32> to vector<8x32xbf16>
    %220 = arith.truncf %218 : vector<8x32xf32> to vector<8x32xbf16>
    %cst_132 = arith.constant dense<0.000000e+00> : vector<8x8xf32>
    %221 = tpu.matmul %219, %220, %cst_132 {dimension_numbers = #tpu.dot_dimension_numbers<[1], [1], [0], [0], [0, 0, 1, 0], [], []>} : vector<8x32xbf16>, vector<8x32xbf16>, vector<8x8xf32> -> vector<8x8xf32>
    %222 = arith.truncf %209 : vector<24x32xf32> to vector<24x32xbf16>
    %cst_133 = arith.constant dense<0.000000e+00> : vector<24x32xf32>
    %223 = tpu.matmul %222, %172, %cst_133 {dimension_numbers = #tpu.dot_dimension_numbers<[1], [0], [0], [1], [0, 0, 1, 1], [], []>} : vector<24x32xbf16>, vector<32x32xbf16>, vector<24x32xf32> -> vector<24x32xf32>
    %224 = vector.broadcast %174 : vector<1x32xf32> to vector<24x32xf32>
    %225 = arith.addf %223, %224 : vector<24x32xf32>
    %cst_134 = arith.constant 0.000000e+00 : f32
    %226 = vector.broadcast %cst_134 : f32 to vector<24x32xf32>
    %227 = arith.maximumf %225, %226 : vector<24x32xf32>
    %228 = arith.truncf %209 : vector<24x32xf32> to vector<24x32xbf16>
    %cst_135 = arith.constant dense<0.000000e+00> : vector<24x32xf32>
    %229 = tpu.matmul %228, %176, %cst_135 {dimension_numbers = #tpu.dot_dimension_numbers<[1], [0], [0], [1], [0, 0, 1, 1], [], []>} : vector<24x32xbf16>, vector<32x32xbf16>, vector<24x32xf32> -> vector<24x32xf32>
    %230 = vector.broadcast %178 : vector<1x32xf32> to vector<24x32xf32>
    %231 = arith.addf %229, %230 : vector<24x32xf32>
    %cst_136 = arith.constant 0.000000e+00 : f32
    %232 = vector.broadcast %cst_136 : f32 to vector<24x32xf32>
    %233 = arith.maximumf %231, %232 : vector<24x32xf32>
    %234 = vector.extract_strided_slice %227 {offsets = [0, 0], sizes = [16, 32], strides = [1, 1]} : vector<24x32xf32> to vector<16x32xf32>
    %235 = arith.truncf %216 : vector<16x16xf32> to vector<16x16xbf16>
    %236 = arith.truncf %234 : vector<16x32xf32> to vector<16x32xbf16>
    %cst_137 = arith.constant dense<0.000000e+00> : vector<16x32xf32>
    %237 = tpu.matmul %235, %236, %cst_137 {dimension_numbers = #tpu.dot_dimension_numbers<[1], [0], [0], [1], [0, 0, 1, 1], [], []>} : vector<16x16xbf16>, vector<16x32xbf16>, vector<16x32xf32> -> vector<16x32xf32>
    %238 = vector.extract_strided_slice %233 {offsets = [0, 0], sizes = [16, 32], strides = [1, 1]} : vector<24x32xf32> to vector<16x32xf32>
    %239 = arith.addf %237, %238 : vector<16x32xf32>
    %240 = vector.extract_strided_slice %227 {offsets = [16, 0], sizes = [8, 32], strides = [1, 1]} : vector<24x32xf32> to vector<8x32xf32>
    %241 = arith.truncf %221 : vector<8x8xf32> to vector<8x8xbf16>
    %242 = arith.truncf %240 : vector<8x32xf32> to vector<8x32xbf16>
    %cst_138 = arith.constant dense<0.000000e+00> : vector<8x32xf32>
    %243 = tpu.matmul %241, %242, %cst_138 {dimension_numbers = #tpu.dot_dimension_numbers<[1], [0], [0], [1], [0, 0, 1, 1], [], []>} : vector<8x8xbf16>, vector<8x32xbf16>, vector<8x32xf32> -> vector<8x32xf32>
    %244 = vector.extract_strided_slice %233 {offsets = [16, 0], sizes = [8, 32], strides = [1, 1]} : vector<24x32xf32> to vector<8x32xf32>
    %245 = arith.addf %243, %244 : vector<8x32xf32>
    %246 = tpu.concatenate %239, %245 in 0 : vector<16x32xf32>, vector<8x32xf32> -> vector<24x32xf32>
    %247 = vector.extract_strided_slice %246 {offsets = [0, 0], sizes = [16, 32], strides = [1, 1]} : vector<24x32xf32> to vector<16x32xf32>
    %248 = vector.extract_strided_slice %246 {offsets = [16, 0], sizes = [8, 32], strides = [1, 1]} : vector<24x32xf32> to vector<8x32xf32>
    %249 = arith.truncf %247 : vector<16x32xf32> to vector<16x32xbf16>
    %cst_139 = arith.constant dense<0.000000e+00> : vector<16x32xf32>
    %250 = tpu.matmul %249, %182, %cst_139 {dimension_numbers = #tpu.dot_dimension_numbers<[1], [0], [0], [1], [0, 0, 1, 1], [], []>} : vector<16x32xbf16>, vector<32x32xbf16>, vector<16x32xf32> -> vector<16x32xf32>
    %251 = arith.truncf %250 : vector<16x32xf32> to vector<16x32xbf16>
    %252 = arith.truncf %248 : vector<8x32xf32> to vector<8x32xbf16>
    %cst_140 = arith.constant dense<0.000000e+00> : vector<16x8xf32>
    %253 = tpu.matmul %251, %252, %cst_140 {dimension_numbers = #tpu.dot_dimension_numbers<[1], [1], [0], [0], [0, 0, 1, 0], [], []>} : vector<16x32xbf16>, vector<8x32xbf16>, vector<16x8xf32> -> vector<16x8xf32>
    %254 = tpu.transpose %253, [1, 0] : vector<16x8xf32> -> vector<8x16xf32>
    %cst_141 = arith.constant 1.000000e+09 : f32
    %255 = vector.broadcast %cst_141 : f32 to vector<1x8xf32>
    %256 = arith.mulf %255, %9 : vector<1x8xf32>
    %257 = vector.broadcast %256 : vector<1x8xf32> to vector<16x8xf32>
    %258 = arith.subf %253, %257 : vector<16x8xf32>
    %cst_142 = arith.constant dense<0xFF800000> : vector<16xf32>
    %259 = vector.multi_reduction <maximumf>, %258, %cst_142 [1] : vector<16x8xf32> to vector<16xf32>
    %260 = vector.shape_cast %259 : vector<16xf32> to vector<16x1xf32>
    %261 = vector.broadcast %260 : vector<16x1xf32> to vector<16x8xf32>
    %262 = arith.subf %258, %261 : vector<16x8xf32>
    %263 = math.exp %262 : vector<16x8xf32>
    %cst_143 = arith.constant dense<0.000000e+00> : vector<16xf32>
    %264 = vector.multi_reduction <add>, %263, %cst_143 [1] : vector<16x8xf32> to vector<16xf32>
    %265 = vector.shape_cast %264 : vector<16xf32> to vector<16x1xf32>
    %266 = tpu.reciprocal %265 {approx = true} : vector<16x1xf32> -> vector<16x1xf32>
    %267 = vector.broadcast %266 : vector<16x1xf32> to vector<16x8xf32>
    %268 = arith.mulf %263, %267 : vector<16x8xf32>
    %cst_144 = arith.constant 1.000000e+09 : f32
    %269 = vector.broadcast %cst_144 : f32 to vector<1x16xf32>
    %270 = arith.mulf %269, %7 : vector<1x16xf32>
    %271 = vector.broadcast %270 : vector<1x16xf32> to vector<8x16xf32>
    %272 = arith.subf %254, %271 : vector<8x16xf32>
    %cst_145 = arith.constant dense<0xFF800000> : vector<8xf32>
    %273 = vector.multi_reduction <maximumf>, %272, %cst_145 [1] : vector<8x16xf32> to vector<8xf32>
    %274 = vector.shape_cast %273 : vector<8xf32> to vector<8x1xf32>
    %275 = vector.broadcast %274 : vector<8x1xf32> to vector<8x16xf32>
    %276 = arith.subf %272, %275 : vector<8x16xf32>
    %277 = math.exp %276 : vector<8x16xf32>
    %cst_146 = arith.constant dense<0.000000e+00> : vector<8xf32>
    %278 = vector.multi_reduction <add>, %277, %cst_146 [1] : vector<8x16xf32> to vector<8xf32>
    %279 = vector.shape_cast %278 : vector<8xf32> to vector<8x1xf32>
    %280 = tpu.reciprocal %279 {approx = true} : vector<8x1xf32> -> vector<8x1xf32>
    %281 = vector.broadcast %280 : vector<8x1xf32> to vector<8x16xf32>
    %282 = arith.mulf %277, %281 : vector<8x16xf32>
    %283 = arith.truncf %268 : vector<16x8xf32> to vector<16x8xbf16>
    %284 = arith.truncf %248 : vector<8x32xf32> to vector<8x32xbf16>
    %cst_147 = arith.constant dense<0.000000e+00> : vector<16x32xf32>
    %285 = tpu.matmul %283, %284, %cst_147 {dimension_numbers = #tpu.dot_dimension_numbers<[1], [0], [0], [1], [0, 0, 1, 1], [], []>} : vector<16x8xbf16>, vector<8x32xbf16>, vector<16x32xf32> -> vector<16x32xf32>
    %286 = arith.truncf %282 : vector<8x16xf32> to vector<8x16xbf16>
    %287 = arith.truncf %247 : vector<16x32xf32> to vector<16x32xbf16>
    %cst_148 = arith.constant dense<0.000000e+00> : vector<8x32xf32>
    %288 = tpu.matmul %286, %287, %cst_148 {dimension_numbers = #tpu.dot_dimension_numbers<[1], [0], [0], [1], [0, 0, 1, 1], [], []>} : vector<8x16xbf16>, vector<16x32xbf16>, vector<8x32xf32> -> vector<8x32xf32>
    %289 = tpu.concatenate %285, %288 in 0 : vector<16x32xf32>, vector<8x32xf32> -> vector<24x32xf32>
    %290 = vector.extract_strided_slice %184 {offsets = [0, 0], sizes = [32, 32], strides = [1, 1]} : vector<64x32xbf16> to vector<32x32xbf16>
    %291 = arith.truncf %246 : vector<24x32xf32> to vector<24x32xbf16>
    %cst_149 = arith.constant dense<0.000000e+00> : vector<24x32xf32>
    %292 = tpu.matmul %291, %290, %cst_149 {dimension_numbers = #tpu.dot_dimension_numbers<[1], [0], [0], [1], [0, 0, 1, 1], [], []>} : vector<24x32xbf16>, vector<32x32xbf16>, vector<24x32xf32> -> vector<24x32xf32>
    %293 = vector.extract_strided_slice %184 {offsets = [32, 0], sizes = [32, 32], strides = [1, 1]} : vector<64x32xbf16> to vector<32x32xbf16>
    %294 = arith.truncf %289 : vector<24x32xf32> to vector<24x32xbf16>
    %cst_150 = arith.constant dense<0.000000e+00> : vector<24x32xf32>
    %295 = tpu.matmul %294, %293, %cst_150 {dimension_numbers = #tpu.dot_dimension_numbers<[1], [0], [0], [1], [0, 0, 1, 1], [], []>} : vector<24x32xbf16>, vector<32x32xbf16>, vector<24x32xf32> -> vector<24x32xf32>
    %296 = arith.addf %292, %295 : vector<24x32xf32>
    %297 = vector.broadcast %186 : vector<1x32xf32> to vector<24x32xf32>
    %298 = arith.addf %296, %297 : vector<24x32xf32>
    %c0_151 = arith.constant 0 : index
    %c0_152 = arith.constant 0 : index
    %c0_153 = arith.constant 0 : index
    %299 = vector.load %arg23[%c0_151, %c0_152, %c0_153] : memref<1x24x32xf32, #tpu.memory_space<vmem>>, vector<1x24x32xf32>
    %300 = vector.shape_cast %299 : vector<1x24x32xf32> to vector<24x32xf32>
    %301 = vector.shape_cast %298 : vector<24x32xf32> to vector<1x24x32xf32>
    tpu.vector_store %arg23[%c0_151, %c0_152, %c0_153], %301 {strides = array<i32>} : memref<1x24x32xf32, #tpu.memory_space<vmem>>, vector<1x24x32xf32>,
    return
  }
  func.func @transform_0(%arg0: i32) -> (i32, i32, i32) {
    %c0_i32 = arith.constant 0 : i32
    %c0_i32_0 = arith.constant 0 : i32
    %c0_i32_1 = arith.constant 0 : i32
    return %arg0, %c0_i32, %c0_i32_0 : i32, i32, i32
  }
  func.func @transform_1(%arg0: i32) -> (i32, i32, i32) {
    %c0_i32 = arith.constant 0 : i32
    %c0_i32_0 = arith.constant 0 : i32
    %c0_i32_1 = arith.constant 0 : i32
    return %arg0, %c0_i32, %c0_i32_0 : i32, i32, i32
  }
  func.func @transform_2(%arg0: i32) -> (i32, i32, i32) {
    %c0_i32 = arith.constant 0 : i32
    %c0_i32_0 = arith.constant 0 : i32
    %c0_i32_1 = arith.constant 0 : i32
    return %arg0, %c0_i32, %c0_i32_0 : i32, i32, i32
  }
  func.func @transform_3(%arg0: i32) -> (i32, i32, i32) {
    %c0_i32 = arith.constant 0 : i32
    %c0_i32_0 = arith.constant 0 : i32
    %c0_i32_1 = arith.constant 0 : i32
    return %arg0, %c0_i32, %c0_i32_0 : i32, i32, i32
  }
  func.func @transform_4(%arg0: i32) -> (i32, i32, i32) {
    %c0_i32 = arith.constant 0 : i32
    %c0_i32_0 = arith.constant 0 : i32
    %c0_i32_1 = arith.constant 0 : i32
    return %arg0, %c0_i32, %c0_i32_0 : i32, i32, i32
  }
  func.func @transform_5(%arg0: i32) -> (i32, i32, i32) {
    %c0_i32 = arith.constant 0 : i32
    %c0_i32_0 = arith.constant 0 : i32
    %c0_i32_1 = arith.constant 0 : i32
    return %arg0, %c0_i32, %c0_i32_0 : i32, i32, i32
  }
  func.func @transform_6(%arg0: i32) -> (i32, i32) {
    %c0_i32 = arith.constant 0 : i32
    %c0_i32_0 = arith.constant 0 : i32
    %c0_i32_1 = arith.constant 0 : i32
    return %c0_i32, %c0_i32_0 : i32, i32
  }
  func.func @transform_7(%arg0: i32) -> (i32, i32) {
    %c0_i32 = arith.constant 0 : i32
    %c0_i32_0 = arith.constant 0 : i32
    %c0_i32_1 = arith.constant 0 : i32
    return %c0_i32, %c0_i32_0 : i32, i32
  }
  func.func @transform_8(%arg0: i32) -> (i32, i32) {
    %c0_i32 = arith.constant 0 : i32
    %c0_i32_0 = arith.constant 0 : i32
    %c0_i32_1 = arith.constant 0 : i32
    return %c0_i32, %c0_i32_0 : i32, i32
  }
  func.func @transform_9(%arg0: i32) -> (i32, i32) {
    %c0_i32 = arith.constant 0 : i32
    %c0_i32_0 = arith.constant 0 : i32
    %c0_i32_1 = arith.constant 0 : i32
    return %c0_i32, %c0_i32_0 : i32, i32
  }
  func.func @transform_10(%arg0: i32) -> (i32, i32, i32) {
    %c0_i32 = arith.constant 0 : i32
    %c0_i32_0 = arith.constant 0 : i32
    %c0_i32_1 = arith.constant 0 : i32
    %c0_i32_2 = arith.constant 0 : i32
    return %c0_i32, %c0_i32_0, %c0_i32_1 : i32, i32, i32
  }
  func.func @transform_11(%arg0: i32) -> (i32, i32, i32) {
    %c0_i32 = arith.constant 0 : i32
    %c0_i32_0 = arith.constant 0 : i32
    %c0_i32_1 = arith.constant 0 : i32
    %c0_i32_2 = arith.constant 0 : i32
    return %c0_i32, %c0_i32_0, %c0_i32_1 : i32, i32, i32
  }
  func.func @transform_12(%arg0: i32) -> (i32, i32, i32) {
    %c0_i32 = arith.constant 0 : i32
    %c0_i32_0 = arith.constant 0 : i32
    %c0_i32_1 = arith.constant 0 : i32
    %c0_i32_2 = arith.constant 0 : i32
    return %c0_i32, %c0_i32_0, %c0_i32_1 : i32, i32, i32
  }
  func.func @transform_13(%arg0: i32) -> (i32, i32, i32) {
    %c0_i32 = arith.constant 0 : i32
    %c0_i32_0 = arith.constant 0 : i32
    %c0_i32_1 = arith.constant 0 : i32
    %c0_i32_2 = arith.constant 0 : i32
    return %c0_i32, %c0_i32_0, %c0_i32_1 : i32, i32, i32
  }
  func.func @transform_14(%arg0: i32) -> (i32, i32, i32) {
    %c0_i32 = arith.constant 0 : i32
    %c0_i32_0 = arith.constant 0 : i32
    %c0_i32_1 = arith.constant 0 : i32
    %c0_i32_2 = arith.constant 0 : i32
    return %c0_i32, %c0_i32_0, %c0_i32_1 : i32, i32, i32
  }
  func.func @transform_15(%arg0: i32) -> (i32, i32, i32) {
    %c0_i32 = arith.constant 0 : i32
    %c0_i32_0 = arith.constant 0 : i32
    %c0_i32_1 = arith.constant 0 : i32
    %c0_i32_2 = arith.constant 0 : i32
    return %c0_i32, %c0_i32_0, %c0_i32_1 : i32, i32, i32
  }
  func.func @transform_16(%arg0: i32) -> (i32, i32, i32) {
    %c0_i32 = arith.constant 0 : i32
    %c0_i32_0 = arith.constant 0 : i32
    %c0_i32_1 = arith.constant 0 : i32
    %c0_i32_2 = arith.constant 0 : i32
    return %c0_i32, %c0_i32_0, %c0_i32_1 : i32, i32, i32
  }
  func.func @transform_17(%arg0: i32) -> (i32, i32, i32) {
    %c0_i32 = arith.constant 0 : i32
    %c0_i32_0 = arith.constant 0 : i32
    %c0_i32_1 = arith.constant 0 : i32
    %c0_i32_2 = arith.constant 0 : i32
    return %c0_i32, %c0_i32_0, %c0_i32_1 : i32, i32, i32
  }
  func.func @transform_18(%arg0: i32) -> (i32, i32, i32) {
    %c0_i32 = arith.constant 0 : i32
    %c0_i32_0 = arith.constant 0 : i32
    %c0_i32_1 = arith.constant 0 : i32
    %c0_i32_2 = arith.constant 0 : i32
    return %c0_i32, %c0_i32_0, %c0_i32_1 : i32, i32, i32
  }
  func.func @transform_19(%arg0: i32) -> (i32, i32, i32) {
    %c0_i32 = arith.constant 0 : i32
    %c0_i32_0 = arith.constant 0 : i32
    %c0_i32_1 = arith.constant 0 : i32
    %c0_i32_2 = arith.constant 0 : i32
    return %c0_i32, %c0_i32_0, %c0_i32_1 : i32, i32, i32
  }
  func.func @transform_20(%arg0: i32) -> (i32, i32, i32) {
    %c0_i32 = arith.constant 0 : i32
    %c0_i32_0 = arith.constant 0 : i32
    %c0_i32_1 = arith.constant 0 : i32
    %c0_i32_2 = arith.constant 0 : i32
    return %c0_i32, %c0_i32_0, %c0_i32_1 : i32, i32, i32
  }
  func.func @transform_21(%arg0: i32) -> (i32, i32, i32) {
    %c0_i32 = arith.constant 0 : i32
    %c0_i32_0 = arith.constant 0 : i32
    %c0_i32_1 = arith.constant 0 : i32
    %c0_i32_2 = arith.constant 0 : i32
    return %c0_i32, %c0_i32_0, %c0_i32_1 : i32, i32, i32
  }
  func.func @transform_22(%arg0: i32) -> (i32, i32, i32) {
    %c0_i32 = arith.constant 0 : i32
    %c0_i32_0 = arith.constant 0 : i32
    %c0_i32_1 = arith.constant 0 : i32
    return %arg0, %c0_i32, %c0_i32_0 : i32, i32, i32
  }
}

</mosaic_0001>

<bundles_post_ra>
// kernel: tpu_custom_call.1
= control target key start
LH: loop header
LB: loop body
LE: loop exit
PB: predicated region body
PF: predicated region fallthrough
CT: control target
= control target key end

     0   :  { %s5905_s0 = inlined_call_operand.vmem [shape: f32[2,16,32], index: 0, kind: input, shape index: {}]   ;;  %s5906_s1 = inlined_call_operand.hbm [shape: f32[2,8,16], index: 1, kind: input, shape index: {}]   ;;  %s5907_s2 = inlined_call_operand.vmem [shape: f32[2,16,16], index: 2, kind: input, shape index: {}]   ;;  %s5908_s3 = inlined_call_operand.hbm [shape: f32[2,8,8], index: 3, kind: input, shape index: {}]   ;;  %s5909_s4 = inlined_call_operand.hbm [shape: f32[2,1,16], index: 4, kind: input, shape index: {}]   ;;  %s5910_s5 = inlined_call_operand.hbm [shape: f32[2,1,8], index: 5, kind: input, shape index: {}]   ;;  %s5911_s6 = inlined_call_operand.hbm [shape: bf16[32,32], index: 6, kind: input, shape index: {}]   ;;  %s5912_s7 = inlined_call_operand.hbm [shape: f32[1,32], index: 7, kind: input, shape index: {}]   ;;  %s5913_s8 = inlined_call_operand.hbm [shape: bf16[16,32], index: 8, kind: input, shape index: {}]   ;;  %s5914_s9 = inlined_call_operand.hbm [shape: f32[1,32], index: 9, kind: input, shape index: {}]   ;;  %s5915_s10 = inlined_call_operand.vmem [shape: bf16[2,32,32], index: 10, kind: input, shape index: {}]   ;;  %s5916_s11 = inlined_call_operand.hbm [shape: f32[2,1,32], index: 11, kind: input, shape index: {}]   ;;  %s5917_s12 = inlined_call_operand.vmem [shape: bf16[2,32,32], index: 12, kind: input, shape index: {}]   ;;  %s5918_s13 = inlined_call_operand.hbm [shape: f32[2,1,32], index: 13, kind: input, shape index: {}]   ;;  %s5919_s14 = inlined_call_operand.hbm [shape: bf16[2,32,32], index: 14, kind: input, shape index: {}]   ;;  %s5920_s15 = inlined_call_operand.hbm [shape: f32[2,1,32], index: 15, kind: input, shape index: {}]   ;;  %s5921_s16 = inlined_call_operand.hbm [shape: bf16[2,32,32], index: 16, kind: input, shape index: {}]   ;;  %s5922_s17 = inlined_call_operand.hbm [shape: f32[2,1,32], index: 17, kind: input, shape index: {}]   ;;  %s5923_s18 = inlined_call_operand.hbm [shape: bf16[2,32,32], index: 18, kind: input, shape index: {}]   ;;  %s5924_s19 = inlined_call_operand.hbm [shape: bf16[2,32,32], index: 19, kind: input, shape index: {}]   ;;  %s5925_s20 = inlined_call_operand.vmem [shape: bf16[2,64,32], index: 20, kind: input, shape index: {}]   ;;  %s5926_s21 = inlined_call_operand.vmem [shape: f32[2,1,32], index: 21, kind: input, shape index: {}]   ;;  %s5927_s22 = inlined_call_operand.hbm [shape: f32[2,24,32], index: 22, kind: output, shape index: {}]  }
   0x1   :  { %5969 = sst [smem:[#allocation46_spill]] %s5905_s0 }
   0x2   :  { %5970 = sst [smem:[#allocation47_spill]] %s5906_s1 }
   0x3   :  { %5971 = sst [smem:[#allocation48_spill]] %s5907_s2 }
   0x4   :  { %5972 = sst [smem:[#allocation49_spill]] %s5908_s3 }
   0x5   :  { %5973 = sst [smem:[#allocation50_spill]] %s5909_s4 }
   0x6   :  { %5974 = sst [smem:[#allocation51_spill]] %s5910_s5 }
   0x7   :  { %5975 = sst [smem:[#allocation52_spill]] %s5911_s6 }
   0x8   :  { %5976 = sst [smem:[#allocation53_spill]] %s5912_s7 }
   0x9   :  { %5977 = sst [smem:[#allocation54_spill]] %s5913_s8 }
   0xa   :  { %5978 = sst [smem:[#allocation55_spill]] %s5914_s9 }
   0xb   :  { %5979 = sst [smem:[#allocation56_spill]] %s5915_s10 }
   0xc   :  { %5980 = sst [smem:[#allocation57_spill]] %s5917_s12 }
   0xd   :  { %5981 = sst [smem:[#allocation58_spill]] %s5918_s13 }
   0xe   :  { %5982 = sst [smem:[#allocation59_spill]] %s5920_s15 }
   0xf   :  { %5983 = sst [smem:[#allocation60_spill]] %s5922_s17 }
  0x10   :  { %5984 = sst [smem:[#allocation61_spill]] %s5923_s18 }
  0x11   :  { %5985 = sst [smem:[#allocation62_spill]] %s5924_s19 }
  0x12   :  { %5986 = sst [smem:[#allocation63_spill]] %s5925_s20 }
  0x13   :  { %5987 = sst [smem:[#allocation64_spill]] %s5926_s21 }
  0x14   :  { %5988 = sst [smem:[#allocation65_spill]] %s5927_s22 }
  0x15   :  { %27 = vsyncpa [#allocation3], 0 }
  0x16   :  { %29 = vsyncpa [#allocation3 + $0x1], 0 }
  0x17   :  { %30 = vsyncpa [#allocation6], 0 }
  0x18   :  { %32 = vsyncpa [#allocation6 + $0x1], 0 }
  0x19   :  { %33 = vsyncpa [#allocation9], 0 }
  0x1a   :  { %35 = vsyncpa [#allocation9 + $0x1], 0 }
  0x1b   :  { %36 = vsyncpa [#allocation12], 0 }
  0x1c   :  { %37 = vsyncpa [#allocation15], 0 }
  0x1d   :  { %38 = vsyncpa [#allocation18], 0 }
  0x1e   :  { %39 = vsyncpa [#allocation21], 0 }
  0x1f   :  { %40 = vsyncpa [#allocation24], 0 }
  0x20   :  { %41 = vsyncpa [#allocation27], 0 }
  0x21   :  { %42 = vsyncpa [#allocation4], 0 }
  0x22   :  { %44 = vsyncpa [#allocation4 + $0x1], 0  ;;  %s5056_s3 = smov 0   ;;  %s5058_s28 = smov 0  }
  0x23   :  { %s5060_s29 = smov 0   ;;  %s5062_s30 = smov 0  }
  0x24 LB: > { %5989 = sst [smem:[#allocation40_spill]] %s4902_s3  ;;  %s4916_s4 = smov [#allocation10]   ;;  %s4914_s30 = sphi %s5062_s30, %s6059_s30   ;;  %s4910_s29 = sphi %s5060_s29, %s6064_s29   ;;  %s4906_s28 = sphi %s5058_s28, %s6063_s28   ;;  %s4902_s3 = sphi %s5056_s3, %s6062_s3  }
  0x25   : > { %5990 = sst [smem:[#allocation41_spill]] %s4910_s29  ;;  %s585_s0 = sshll.u32 %s4916_s4, 4  ;;  %s5082_s0 = int_to_ptr.vmem [resolvable:$true] %s585_s0 }
  0x26   : > { %s5077_s23 = sadd.s32 4294967295, %s4914_s30   ;;  %p3594_p0 = scmp.ge.s32.totalorder %s4914_s30, 1 }
  0x27   : > { %p5943_p1 = scmp.eq.s32.totalorder %s5077_s23, 0  ;;  %p573_p2 = scmp.lt.s32.totalorder %s4914_s30, 3 }
  0x28   : > { %s4917_s5 = smov [#allocation11]   ;;  %s4918_s25 = smov [#allocation14]  }
  0x29   : > { %p5084_p3 = pnand %p3594_p0, %p573_p2  ;;  %s599_s24 = sshll.u32 %s4917_s5, 4  ;;  %s5097_s24 = int_to_ptr.vmem [resolvable:$true] %s599_s24 }
  0x2a   : > { %s623_s26 = sshll.u32 %s4918_s25, 4  ;;  %s5994_s4 = sld [smem:[#allocation52_spill]]  ;;  %s5099_s26 = int_to_ptr.vmem [resolvable:$true] %s623_s26 }
  0x2b   : > { %s5991_s1 = scalar_select %p5084_p3, 1, 0 }
  0x2c   : > { %p4165_p5 = pneg %p5084_p3 }
  0x2d   : > { %5992 = sst [smem:[#allocation42_spill]] %s5991_s1 }
  0x2e   : > { %p5093_p6 = pnand %p4165_p5, %p5943_p1 }
  0x30   : > { %s5993_s6 = scalar_select %p5093_p6, 1, 0 }
  0x31   : > { %s4356_s22 = scalar_lea.hbm %s5994_s4, 256  ;;  %p5109_p8 = pneg %p5093_p6 }
  0x32   : > { %p4357_p7 = scmp.ne.s32.totalorder %s5994_s4, %s4356_s22  ;;  %p4363_p11 = scmp.lt.u32.totalorder %s4356_s22, %s5994_s4 }
  0x33   : > { %s5995_s5 = scalar_select %p5109_p8, 1, 0 }
  0x34   : > { %p4359_p9 = pnand %p5109_p8, %p4357_p7 }
  0x36   : > { %p4360_p10 = pneg %p4359_p9 }
  0x38   : > { %p4365_p12 = pnand %p4363_p11, %p4360_p10 }
  0x3a   : > { %4368 = shalt.err (!%p4365_p12)
}
  0x3b   : > { %s4369_s20 = scalar_lea.vmem %s5082_s0, 256  ;;  %p4377_p5 = scmp.lt.s32.totalorder %s5082_s0, %s5082_s0 }
  0x3c   : > { %p4370_p13 = scmp.ne.s32.totalorder %s5082_s0, %s4369_s20  ;;  %p4378_p4 = scmp.lt.s32.totalorder %s4369_s20, %s4369_s20 }
  0x3e   : > { %p4372_p0 = pnand %p4370_p13, %p5109_p8  ;;  %p4379_p7 = por %p4378_p4, %p4377_p5 }
  0x40   : > { %p4373_p2 = pneg %p4372_p0 }
  0x42   : > { %p4380_p9 = pnand %p4379_p7, %p4373_p2 }
  0x44   : > { %4383 = shalt.err (!%p4380_p9)
}
  0x45   : > { %s5941_s21 = smov 64   ;;  %s5945_s12 = smov 4  }
  0x46   : > { %4168 = dma.hbm_to_vmem [thread:$0]  (!%p5093_p6), %s5994_s4, 256, %s5082_s0, [#allocation9], %s5941_s21, %s5941_s21, %s5945_s12  }
  0x47   : > { %s5996_s7 = sld [smem:[#allocation53_spill]] }
  0x4d   : > { %s4384_s20 = scalar_lea.hbm %s5996_s7, 16 }
  0x4e   : > { %p4385_p4 = scmp.ne.s32.totalorder %s5996_s7, %s4384_s20  ;;  %p4391_p12 = scmp.lt.u32.totalorder %s4384_s20, %s5996_s7 }
  0x50   : > { %p4387_p10 = pnand %p4385_p4, %p5109_p8 }
  0x52   : > { %p4388_p11 = pneg %p4387_p10 }
  0x54   : > { %p4393_p13 = pnand %p4391_p12, %p4388_p11 }
  0x56   : > { %4396 = shalt.err (!%p4393_p13)
}
  0x57   : > { %s4397_s0 = scalar_lea.vmem %s5097_s24, 16  ;;  %s4404_s10 = scalar_lea.vmem %s5097_s24, 32 }
  0x58   : > { %p4398_p0 = scmp.ne.s32.totalorder %s5097_s24, %s4397_s0  ;;  %p4405_p7 = scmp.lt.s32.totalorder %s5097_s24, %s5097_s24 }
  0x59   : > { %p4406_p9 = scmp.lt.s32.totalorder %s4404_s10, %s4397_s0 }
  0x5a   : > { %p4400_p2 = pnand %p4398_p0, %p5109_p8 }
  0x5b   : > { %p4407_p4 = por %p4406_p9, %p4405_p7 }
  0x5c   : > { %p4401_p5 = pneg %p4400_p2 }
  0x5e   : > { %p4408_p10 = pnand %p4407_p4, %p4401_p5 }
  0x60   : > { %4411 = shalt.err (!%p4408_p10)
}
  0x61   : > { %4171 = dma.hbm_to_vmem [thread:$0]  (!%p5093_p6), %s5996_s7, 16, %s5097_s24, [#allocation12]  }
  0x62   : > { %s5997_s9 = sld [smem:[#allocation55_spill]] }
  0x68   : > { %s4412_s2 = scalar_lea.hbm %s5997_s9, 16 }
  0x69   : > { %p4413_p11 = scmp.ne.s32.totalorder %s5997_s9, %s4412_s2  ;;  %p4419_p0 = scmp.lt.u32.totalorder %s4412_s2, %s5997_s9 }
  0x6b   : > { %p4415_p12 = pnand %p4413_p11, %p5109_p8 }
  0x6d   : > { %p4416_p13 = pneg %p4415_p12 }
  0x6f   : > { %p4421_p2 = pnand %p4419_p0, %p4416_p13 }
  0x71   : > { %4424 = shalt.err (!%p4421_p2)
}
  0x72   : > { %s4425_s24 = scalar_lea.vmem %s5099_s26, 16  ;;  %s4432_s10 = scalar_lea.vmem %s5099_s26, 32 }
  0x73   : > { %p4426_p5 = scmp.ne.s32.totalorder %s5099_s26, %s4425_s24  ;;  %p4433_p4 = scmp.lt.s32.totalorder %s5099_s26, %s5099_s26 }
  0x74   : > { %p4434_p10 = scmp.lt.s32.totalorder %s4432_s10, %s4425_s24 }
  0x75   : > { %p4428_p7 = pnand %p4426_p5, %p5109_p8 }
  0x76   : > { %p4435_p11 = por %p4434_p10, %p4433_p4 }
  0x77   : > { %p4429_p9 = pneg %p4428_p7 }
  0x79   : > { %p4436_p12 = pnand %p4435_p11, %p4429_p9 }
  0x7b   : > { %4439 = shalt.err (!%p4436_p12)
}
  0x7c   : > { %4177 = dma.hbm_to_vmem [thread:$0]  (!%p5093_p6), %s5997_s9, 16, %s5099_s26, [#allocation15]  }
  0x7d   : > { %s4921_s1 = smov [#allocation17]   ;;  %s4922_s2 = smov [#allocation20]  }
  0x7e   : > { %s652_s22 = sshll.u32 %s4921_s1, 4  ;;  %s678_s27 = sshll.u32 %s4922_s2, 4  ;;  %s653_s22 = int_to_ptr.vmem [resolvable:$true] %s652_s22  ;;  %s679_s27 = int_to_ptr.vmem [resolvable:$true] %s678_s27 }
  0x7f   : > { %s5998_s13 = sld [smem:[#allocation58_spill]] }
  0x85   : > { %s4440_s0 = scalar_lea.hbm %s5998_s13, 32 }
  0x86   : > { %p4441_p13 = scmp.ne.s32.totalorder %s5998_s13, %s4440_s0  ;;  %p4447_p5 = scmp.lt.u32.totalorder %s4440_s0, %s5998_s13 }
  0x88   : > { %p4443_p0 = pnand %p4441_p13, %p5109_p8 }
  0x8a   : > { %p4444_p2 = pneg %p4443_p0 }
  0x8c   : > { %p4449_p7 = pnand %p4447_p5, %p4444_p2 }
  0x8e   : > { %4452 = shalt.err (!%p4449_p7)
}
  0x8f   : > { %s4453_s26 = scalar_lea.vmem %s653_s22, 32  ;;  %p4461_p11 = scmp.lt.s32.totalorder %s653_s22, %s653_s22 }
  0x90   : > { %p4454_p9 = scmp.ne.s32.totalorder %s653_s22, %s4453_s26  ;;  %p4462_p12 = scmp.lt.s32.totalorder %s4453_s26, %s4453_s26 }
  0x92   : > { %p4456_p4 = pnand %p4454_p9, %p5109_p8  ;;  %p4463_p1 = por %p4462_p12, %p4461_p11 }
  0x94   : > { %p4457_p10 = pneg %p4456_p4 }
  0x96   : > { %p4464_p3 = pnand %p4463_p1, %p4457_p10 }
  0x98   : > { %4467 = shalt.err (!%p4464_p3)
}
  0x99   : > { %s5947_s19 = smov 16   ;;  %s5948_s1 = smov 1  }
  0x9a   : > { %4183 = dma.hbm_to_vmem [thread:$0]  (!%p5093_p6), %s5998_s13, 32, %s653_s22, [#allocation18], %s5947_s19, %s5947_s19, %s5948_s1  }
  0x9b   : > { %s5999_s15 = sld [smem:[#allocation59_spill]] }
  0xa1   : > { %s4468_s0 = scalar_lea.hbm %s5999_s15, 32 }
  0xa2   : > { %p4469_p1 = scmp.ne.s32.totalorder %s5999_s15, %s4468_s0  ;;  %p4475_p0 = scmp.lt.u32.totalorder %s4468_s0, %s5999_s15 }
  0xa4   : > { %p4471_p3 = pnand %p4469_p1, %p5109_p8 }
  0xa6   : > { %p4472_p13 = pneg %p4471_p3 }
  0xa8   : > { %p4477_p2 = pnand %p4475_p0, %p4472_p13 }
  0xaa   : > { %4480 = shalt.err (!%p4477_p2)
}
  0xab   : > { %s4481_s21 = scalar_lea.vmem %s679_s27, 32  ;;  %p4489_p4 = scmp.lt.s32.totalorder %s679_s27, %s679_s27 }
  0xac   : > { %p4482_p5 = scmp.ne.s32.totalorder %s679_s27, %s4481_s21  ;;  %p4490_p10 = scmp.lt.s32.totalorder %s4481_s21, %s4481_s21 }
  0xae   : > { %p4484_p7 = pnand %p4482_p5, %p5109_p8  ;;  %p4491_p11 = por %p4490_p10, %p4489_p4 }
  0xb0   : > { %p4485_p9 = pneg %p4484_p7 }
  0xb2   : > { %p4492_p12 = pnand %p4491_p11, %p4485_p9 }
  0xb4   : > { %4495 = shalt.err (!%p4492_p12)
}
  0xb5   : > { %4189 = dma.hbm_to_vmem [thread:$0]  (!%p5093_p6), %s5999_s15, 32, %s679_s27, [#allocation21], %s5947_s19, %s5947_s19, %s5948_s1  }
  0xb6   : > { %s4925_s25 = smov [#allocation23]   ;;  %s6000_s17 = sld [smem:[#allocation60_spill]] }
  0xb7   : > { %s704_s20 = sshll.u32 %s4925_s25, 4  ;;  %s705_s20 = int_to_ptr.vmem [resolvable:$true] %s704_s20 }
  0xbc   : > { %s4496_s10 = scalar_lea.hbm %s6000_s17, 32 }
  0xbd   : > { %p4497_p1 = scmp.ne.s32.totalorder %s6000_s17, %s4496_s10  ;;  %p4503_p0 = scmp.lt.u32.totalorder %s4496_s10, %s6000_s17 }
  0xbf   : > { %p4499_p3 = pnand %p4497_p1, %p5109_p8 }
  0xc1   : > { %p4500_p13 = pneg %p4499_p3 }
  0xc3   : > { %p4505_p2 = pnand %p4503_p0, %p4500_p13 }
  0xc5   : > { %4508 = shalt.err (!%p4505_p2)
}
  0xc6   : > { %s4509_s27 = scalar_lea.vmem %s705_s20, 32  ;;  %p4517_p4 = scmp.lt.s32.totalorder %s705_s20, %s705_s20 }
  0xc7   : > { %p4510_p5 = scmp.ne.s32.totalorder %s705_s20, %s4509_s27  ;;  %p4518_p10 = scmp.lt.s32.totalorder %s4509_s27, %s4509_s27 }
  0xc9   : > { %p4512_p7 = pnand %p4510_p5, %p5109_p8  ;;  %p4519_p11 = por %p4518_p10, %p4517_p4 }
  0xcb   : > { %p4513_p9 = pneg %p4512_p7 }
  0xcd   : > { %p4520_p12 = pnand %p4519_p11, %p4513_p9 }
  0xcf   : > { %4523 = shalt.err (!%p4520_p12)
}
  0xd0   : > { %4195 = dma.hbm_to_vmem [thread:$0]  (!%p5093_p6), %s6000_s17, 32, %s705_s20, [#allocation24], %s5947_s19, %s5947_s19, %s5948_s1  }
  0xd1   : > { %s3593_s2 = sadd.s32 4294967294, %s4914_s30   ;;  %s5246_s25 = sadd.s32 1, %s4914_s30  }
  0xd2   : > { %6001 = sst [smem:[#allocation43_spill]] %s5246_s25  ;;  %s80_s0 = ssub.s32 %s4914_s30, %s5246_s25 }
  0xd3   : > { %s83_s24 = sadd.s32 1, %s4910_s29  ;;  %p81_p1 = scmp.eq.s32.totalorder %s80_s0, 0 }
  0xd4   : > { %p90_p3 = scmp.ne.s32.totalorder %s4910_s29, %s4906_s28  ;;  %p91_p13 = scmp.eq.s32.totalorder %s4914_s30, 0 }
  0xd5   : > { %p96_p0 = scmp.ne.s32.totalorder %s4906_s28, %s4902_s3  ;;  %p6003_p5 = scmp.eq.s32.totalorder %s5077_s23, 0 }
  0xd6   : > { %s5257_s10 = scalar_select %p81_p1, %s4910_s29, %s83_s24  }
  0xd7   : > { %p92_p2 = por %p91_p13, %p90_p3  ;;  %p5261_p7 = por %p6003_p5, %p96_p0 }
  0xd8   : > { %6002 = sst [smem:[#allocation44_spill]] %s5257_s10  ;;  %p560_p9 = scmp.eq.s32.totalorder %s5077_s23, 1 }
  0xd9   : > { %s6004_s20 = scalar_select %p5261_p7, 1, 0 }
  0xda   : > { %p566_p4 = scmp.eq.s32.totalorder %s3593_s2, 1  ;;  %p4231_p10 = scmp.lt.s32.totalorder %s4914_s30, 2 }
  0xdb   : > { %s5268_s18 = sand.u32 1, %s4910_s29   ;;  %p5270_p11 = por %p560_p9, %p90_p3 }
  0xdc   : > { %p5274_p12 = por %p566_p4, %p96_p0  ;;  %s5950_s27 = sshll.u32 %s5268_s18, 3 }
  0xdd   : > { %s6005_s26 = scalar_select %p5270_p11, 1, 0 }
  0xde   : > { %s6006_s21 = scalar_select %p5274_p12, 1, 0 }
  0xdf   : > { %s5951_s12 = sshll.u32 %s4914_s30, 7  ;;  %p5280_p1 = pnand %p4231_p10, %p92_p2 }
  0xe0   : > { %6007 = sst [smem:[#allocation45_spill]] %s6006_s21  ;;  %s5953_s2 = sand.u32 1, %s4914_s30  }
  0xe1   : > { %s6008_s22 = scalar_select %p5280_p1, 1, 0 }
  0xe2   : > { %s6009_s19 = sld [smem:[#allocation49_spill]]  ;;  %s788_s4 = scalar_lea.vmem [#allocation5], %s5950_s27 }
  0xe3   : > { %s795_s7 = sshll.u32 %s788_s4, 4  ;;  %s5298_s9 = scalar_lea.sflag [#allocation6], %s5953_s2  ;;  %s5294_s7 = int_to_ptr.vmem [resolvable:$true] %s795_s7 }
  0xe4   : > { %p5304_p13 = pneg %p5280_p1 }
  0xe6   : > { %s6010_s15 = scalar_select %p5304_p13, 1, 0 }
  0xe8   : > { %s5290_s1 = scalar_lea.hbm %s6009_s19, %s5951_s12  ;;  %s4529_s4 = scalar_lea.hbm %s6009_s19, 256 }
  0xe9   : > { %s4524_s13 = scalar_lea.hbm %s5290_s1, 128  ;;  %p4530_p5 = scmp.lt.u32.totalorder %s5290_s1, %s6009_s19 }
  0xea   : > { %p4525_p3 = scmp.ne.s32.totalorder %s5290_s1, %s4524_s13  ;;  %p4531_p9 = scmp.lt.u32.totalorder %s4529_s4, %s4524_s13 }
  0xeb   : > { %p4533_p10 = scmp.lt.u32.totalorder %s4524_s13, %s5290_s1 }
  0xec   : > { %p4527_p0 = pnand %p5304_p13, %p4525_p3  ;;  %p4532_p4 = por %p4531_p9, %p4530_p5 }
  0xee   : > { %p4528_p2 = pneg %p4527_p0  ;;  %p4534_p12 = por %p4533_p10, %p4532_p4 }
  0xf0   : > { %p4535_p11 = pnand %p4534_p12, %p4528_p2 }
  0xf2   : > { %4538 = shalt.err (!%p4535_p11)
}
  0xf3   : > { %s4539_s2 = scalar_lea.vmem %s5294_s7, 128  ;;  %s4926_s0 = smov [#allocation5]  }
  0xf4   : > { %p4540_p3 = scmp.ne.s32.totalorder %s5294_s7, %s4539_s2  ;;  %s4544_s24 = sshll.u32 %s4926_s0, 4  ;;  %s4545_s24 = int_to_ptr.vmem [resolvable:$false] %s4544_s24 }
  0xf5   : > { %s4546_s27 = scalar_lea.vmem %s4545_s24, 256  ;;  %p4547_p6 = scmp.lt.s32.totalorder %s5294_s7, %s4545_s24 }
  0xf6   : > { %p4542_p0 = pnand %p4540_p3, %p5304_p13  ;;  %p4548_p8 = scmp.lt.s32.totalorder %s4546_s27, %s4539_s2 }
  0xf8   : > { %p4543_p7 = pneg %p4542_p0  ;;  %p4549_p5 = por %p4548_p8, %p4547_p6 }
  0xfa   : > { %p4550_p9 = pnand %p4549_p5, %p4543_p7 }
  0xfc   : > { %4553 = shalt.err (!%p4550_p9)
}
  0xfd   : > { %4208 = dma.hbm_to_vmem [thread:$0]  (!%p5280_p1), %s5290_s1, 128, %s5294_s7, %s5298_s9  }
  0xfe   : > { %s4927_s13 = smov [#allocation13]   ;;  %s4928_s4 = smov [#allocation16]  }
  0xff   : > { %s609_s12 = sshll.u32 %s4927_s13, 4  ;;  %s636_s17 = sshll.u32 %s4928_s4, 4  ;;  %s610_s12 = int_to_ptr.vmem [resolvable:$true] %s609_s12  ;;  %s637_s17 = int_to_ptr.vmem [resolvable:$true] %s636_s17 }
 0x100   : > { %s6011_s8 = sld [smem:[#allocation54_spill]]  ;;  %p6012_p8 = scmp.ne.s32.totalorder %s5995_s5, 0 }
 0x106   : > { %s4554_s24 = scalar_lea.hbm %s6011_s8, 128 }
 0x107   : > { %p4555_p6 = scmp.ne.s32.totalorder %s6011_s8, %s4554_s24  ;;  %p4561_p12 = scmp.lt.u32.totalorder %s4554_s24, %s6011_s8 }
 0x109   : > { %p4557_p7 = pnand %p4555_p6, %p6012_p8 }
 0x10b   : > { %p4558_p11 = pneg %p4557_p7 }
 0x10d   : > { %p4563_p2 = pnand %p4561_p12, %p4558_p11 }
 0x10f   : > { %4566 = shalt.err (!%p4563_p2)
}
 0x110   : > { %s4567_s7 = scalar_lea.vmem %s610_s12, 128  ;;  %p4575_p0 = scmp.lt.s32.totalorder %s610_s12, %s610_s12 }
 0x111   : > { %p4568_p4 = scmp.ne.s32.totalorder %s610_s12, %s4567_s7  ;;  %p4576_p5 = scmp.lt.s32.totalorder %s4567_s7, %s4567_s7 }
 0x113   : > { %p4570_p10 = pnand %p4568_p4, %p6012_p8  ;;  %p4577_p9 = por %p4576_p5, %p4575_p0 }
 0x115   : > { %p4571_p3 = pneg %p4570_p10 }
 0x117   : > { %p4578_p1 = pnand %p4577_p9, %p4571_p3 }
 0x119   : > { %4581 = shalt.err (!%p4578_p1)
}
 0x11a   : > { %p6013_p6 = scmp.ne.s32.totalorder %s5993_s6, 0  ;;  %s6014_s19 = smov 4  }
 0x11b   : > { %s6015_s1 = smov 64   ;;  %s4582_s0 = scalar_lea.hbm %s5916_s11, 32 }
 0x11c   : > { %4174 = dma.hbm_to_vmem [thread:$0]  (!%p6013_p6), %s6011_s8, 128, %s610_s12, [#allocation12], %s6015_s1, %s6015_s1, %s6014_s19  }
 0x11d   : > { %p4583_p7 = scmp.ne.s32.totalorder %s5916_s11, %s4582_s0  ;;  %p4589_p12 = scmp.lt.u32.totalorder %s4582_s0, %s5916_s11 }
 0x11f   : > { %p4585_p1 = pnand %p4583_p7, %p6012_p8 }
 0x121   : > { %p4586_p11 = pneg %p4585_p1 }
 0x123   : > { %p4591_p2 = pnand %p4589_p12, %p4586_p11 }
 0x125   : > { %4594 = shalt.err (!%p4591_p2)
}
 0x126   : > { %s4595_s29 = scalar_lea.vmem %s637_s17, 32  ;;  %p4603_p0 = scmp.lt.s32.totalorder %s637_s17, %s637_s17 }
 0x127   : > { %p4596_p4 = scmp.ne.s32.totalorder %s637_s17, %s4595_s29  ;;  %p4604_p5 = scmp.lt.s32.totalorder %s4595_s29, %s4595_s29 }
 0x129   : > { %p4598_p10 = pnand %p4596_p4, %p6012_p8  ;;  %p4605_p9 = por %p4604_p5, %p4603_p0 }
 0x12b   : > { %p4599_p3 = pneg %p4598_p10 }
 0x12d   : > { %p4606_p13 = pnand %p4605_p9, %p4599_p3 }
 0x12f   : > { %4609 = shalt.err (!%p4606_p13)
}
 0x130   : > { %s6016_s12 = smov 1   ;;  %s6017_s10 = smov 16  }
 0x131   : > { %4180 = dma.hbm_to_vmem [thread:$0]  (!%p6013_p6), %s5916_s11, 32, %s637_s17, [#allocation15], %s6017_s10, %s6017_s10, %s6016_s12  }
 0x132   : > { %s4929_s0 = smov [#allocation19]   ;;  %s4930_s2 = smov [#allocation22]  }
 0x133   : > { %s665_s24 = sshll.u32 %s4929_s0, 4  ;;  %s691_s27 = sshll.u32 %s4930_s2, 4  ;;  %s666_s24 = int_to_ptr.vmem [resolvable:$true] %s665_s24  ;;  %s692_s27 = int_to_ptr.vmem [resolvable:$true] %s691_s27 }
 0x134   : > { %s4610_s8 = scalar_lea.hbm %s5919_s14, 512 }
 0x135   : > { %p4611_p13 = scmp.ne.s32.totalorder %s5919_s14, %s4610_s8  ;;  %p4617_p11 = scmp.lt.u32.totalorder %s4610_s8, %s5919_s14 }
 0x137   : > { %p4613_p7 = pnand %p4611_p13, %p6012_p8 }
 0x139   : > { %p4614_p1 = pneg %p4613_p7 }
 0x13b   : > { %p4619_p12 = pnand %p4617_p11, %p4614_p1 }
 0x13d   : > { %4622 = shalt.err (!%p4619_p12)
}
 0x13e   : > { %s4623_s17 = scalar_lea.vmem %s666_s24, 512  ;;  %p4631_p3 = scmp.lt.s32.totalorder %s666_s24, %s666_s24 }
 0x13f   : > { %p4624_p2 = scmp.ne.s32.totalorder %s666_s24, %s4623_s17  ;;  %p4632_p0 = scmp.lt.s32.totalorder %s4623_s17, %s4623_s17 }
 0x141   : > { %p4626_p4 = pnand %p4624_p2, %p6012_p8  ;;  %p4633_p5 = por %p4632_p0, %p4631_p3 }
 0x143   : > { %p4627_p10 = pneg %p4626_p4 }
 0x145   : > { %p4634_p9 = pnand %p4633_p5, %p4627_p10 }
 0x147   : > { %4637 = shalt.err (!%p4634_p9)
}
 0x148   : > { %4186 = dma.hbm_to_vmem [thread:$0]  (!%p6013_p6), %s5919_s14, 512, %s666_s24, [#allocation18], %s6015_s1, %s6015_s1, %s6014_s19  }
 0x149   : > { %s4638_s12 = scalar_lea.hbm %s5921_s16, 512 }
 0x14a   : > { %p4639_p13 = scmp.ne.s32.totalorder %s5921_s16, %s4638_s12  ;;  %p4645_p11 = scmp.lt.u32.totalorder %s4638_s12, %s5921_s16 }
 0x14c   : > { %p4641_p7 = pnand %p4639_p13, %p6012_p8 }
 0x14e   : > { %p4642_p1 = pneg %p4641_p7 }
 0x150   : > { %p4647_p12 = pnand %p4645_p11, %p4642_p1 }
 0x152   : > { %4650 = shalt.err (!%p4647_p12)
}
 0x153   : > { %s4651_s7 = scalar_lea.vmem %s692_s27, 512  ;;  %p4659_p3 = scmp.lt.s32.totalorder %s692_s27, %s692_s27 }
 0x154   : > { %p4652_p2 = scmp.ne.s32.totalorder %s692_s27, %s4651_s7  ;;  %p4660_p0 = scmp.lt.s32.totalorder %s4651_s7, %s4651_s7 }
 0x156   : > { %p4654_p4 = pnand %p4652_p2, %p6012_p8  ;;  %p4661_p5 = por %p4660_p0, %p4659_p3 }
 0x158   : > { %p4655_p10 = pneg %p4654_p4 }
 0x15a   : > { %p4662_p9 = pnand %p4661_p5, %p4655_p10 }
 0x15c   : > { %4665 = shalt.err (!%p4662_p9)
}
 0x15d   : > { %4192 = dma.hbm_to_vmem [thread:$0]  (!%p6013_p6), %s5921_s16, 512, %s692_s27, [#allocation21], %s6015_s1, %s6015_s1, %s6014_s19  }
 0x15e   : > { %s4931_s13 = smov [#allocation25]   ;;  %s4932_s3 = smov [#allocation26]  }
 0x15f   : > { %s717_s17 = sshll.u32 %s4931_s13, 4  ;;  %s730_s8 = sshll.u32 %s4932_s3, 4  ;;  %s718_s17 = int_to_ptr.vmem [resolvable:$true] %s717_s17  ;;  %s731_s8 = int_to_ptr.vmem [resolvable:$true] %s730_s8 }
 0x160   : > { %s6018_s12 = sld [smem:[#allocation61_spill]] }
 0x166   : > { %s4666_s10 = scalar_lea.hbm %s6018_s12, 512 }
 0x167   : > { %p4667_p13 = scmp.ne.s32.totalorder %s6018_s12, %s4666_s10  ;;  %p4673_p11 = scmp.lt.u32.totalorder %s4666_s10, %s6018_s12 }
 0x169   : > { %p4669_p7 = pnand %p4667_p13, %p6012_p8 }
 0x16b   : > { %p4670_p1 = pneg %p4669_p7 }
 0x16d   : > { %p4675_p12 = pnand %p4673_p11, %p4670_p1 }
 0x16f   : > { %4678 = shalt.err (!%p4675_p12)
}
 0x170   : > { %s4679_s27 = scalar_lea.vmem %s718_s17, 512  ;;  %p4687_p3 = scmp.lt.s32.totalorder %s718_s17, %s718_s17 }
 0x171   : > { %p4680_p2 = scmp.ne.s32.totalorder %s718_s17, %s4679_s27  ;;  %p4688_p0 = scmp.lt.s32.totalorder %s4679_s27, %s4679_s27 }
 0x173   : > { %p4682_p4 = pnand %p4680_p2, %p6012_p8  ;;  %p4689_p5 = por %p4688_p0, %p4687_p3 }
 0x175   : > { %p4683_p10 = pneg %p4682_p4 }
 0x177   : > { %p4690_p9 = pnand %p4689_p5, %p4683_p10 }
 0x179   : > { %4693 = shalt.err (!%p4690_p9)
}
 0x17a   : > { %4198 = dma.hbm_to_vmem [thread:$0]  (!%p6013_p6), %s6018_s12, 512, %s718_s17, [#allocation24], %s6015_s1, %s6015_s1, %s6014_s19  }
 0x17b   : > { %s6019_s25 = sld [smem:[#allocation62_spill]] }
 0x181   : > { %s4694_s21 = scalar_lea.hbm %s6019_s25, 512 }
 0x182   : > { %p4695_p13 = scmp.ne.s32.totalorder %s6019_s25, %s4694_s21  ;;  %p4701_p11 = scmp.lt.u32.totalorder %s4694_s21, %s6019_s25 }
 0x184   : > { %p4697_p7 = pnand %p4695_p13, %p6012_p8 }
 0x186   : > { %p4698_p1 = pneg %p4697_p7 }
 0x188   : > { %p4703_p12 = pnand %p4701_p11, %p4698_p1 }
 0x18a   : > { %4706 = shalt.err (!%p4703_p12)
}
 0x18b   : > { %s4707_s7 = scalar_lea.vmem %s731_s8, 512  ;;  %p4715_p3 = scmp.lt.s32.totalorder %s731_s8, %s731_s8 }
 0x18c   : > { %p4708_p2 = scmp.ne.s32.totalorder %s731_s8, %s4707_s7  ;;  %p4716_p0 = scmp.lt.s32.totalorder %s4707_s7, %s4707_s7 }
 0x18e   : > { %p4710_p4 = pnand %p4708_p2, %p6012_p8  ;;  %p4717_p5 = por %p4716_p0, %p4715_p3 }
 0x190   : > { %p4711_p10 = pneg %p4710_p4 }
 0x192   : > { %p4718_p9 = pnand %p4717_p5, %p4711_p10 }
 0x194   : > { %4721 = shalt.err (!%p4718_p9)
}
 0x195   : > { %4201 = dma.hbm_to_vmem [thread:$0]  (!%p6013_p6), %s6019_s25, 512, %s731_s8, [#allocation27], %s6015_s1, %s6015_s1, %s6014_s19  }
 0x196   : > { %s6020_s5 = sshll.u32 %s4914_s30, 7  ;;  %s6021_s13 = sld [smem:[#allocation47_spill]] }
 0x197   : > { %s6022_s21 = sshll.u32 %s5268_s18, 3  ;;  %s3612_s4 = sshll.u32 %s4914_s30, 4 }
 0x198   : > { %s762_s6 = scalar_lea.vmem [#allocation2], %s6022_s21  ;;  %s759_s0 = scalar_lea.sflag [#allocation3], %s5268_s18 }
 0x199   : > { %s769_s10 = sshll.u32 %s762_s6, 4  ;;  %p6023_p6 = scmp.ne.s32.totalorder %s6010_s15, 0  ;;  %s5463_s10 = int_to_ptr.vmem [resolvable:$true] %s769_s10 }
 0x19c   : > { %s5459_s3 = scalar_lea.hbm %s6021_s13, %s6020_s5  ;;  %s4727_s8 = scalar_lea.hbm %s6021_s13, 256 }
 0x19d   : > { %s4722_s2 = scalar_lea.hbm %s5459_s3, 128  ;;  %p4728_p1 = scmp.lt.u32.totalorder %s5459_s3, %s6021_s13 }
 0x19e   : > { %p4723_p8 = scmp.ne.s32.totalorder %s5459_s3, %s4722_s2  ;;  %p4729_p11 = scmp.lt.u32.totalorder %s4727_s8, %s4722_s2 }
 0x19f   : > { %p4731_p2 = scmp.lt.u32.totalorder %s4722_s2, %s5459_s3 }
 0x1a0   : > { %p4725_p13 = pnand %p4723_p8, %p6023_p6  ;;  %p4730_p12 = por %p4729_p11, %p4728_p1 }
 0x1a2   : > { %p4726_p7 = pneg %p4725_p13  ;;  %p4732_p4 = por %p4731_p2, %p4730_p12 }
 0x1a4   : > { %p4733_p10 = pnand %p4732_p4, %p4726_p7 }
 0x1a6   : > { %4736 = shalt.err (!%p4733_p10)
}
 0x1a7   : > { %s4737_s27 = scalar_lea.vmem %s5463_s10, 128  ;;  %s4933_s5 = smov [#allocation2]  }
 0x1a8   : > { %p4738_p3 = scmp.ne.s32.totalorder %s5463_s10, %s4737_s27  ;;  %s4742_s24 = sshll.u32 %s4933_s5, 4  ;;  %s4743_s24 = int_to_ptr.vmem [resolvable:$false] %s4742_s24 }
 0x1a9   : > { %s4744_s29 = scalar_lea.vmem %s4743_s24, 256  ;;  %p4745_p9 = scmp.lt.s32.totalorder %s5463_s10, %s4743_s24 }
 0x1aa   : > { %p4740_p0 = pnand %p4738_p3, %p6023_p6  ;;  %p4746_p8 = scmp.lt.s32.totalorder %s4744_s29, %s4737_s27 }
 0x1ac   : > { %p4741_p5 = pneg %p4740_p0  ;;  %p4747_p13 = por %p4746_p8, %p4745_p9 }
 0x1ae   : > { %p4748_p1 = pnand %p4747_p13, %p4741_p5 }
 0x1b0   : > { %4751 = shalt.err (!%p4748_p1)
}
 0x1b1   : > { %p6024_p7 = scmp.ne.s32.totalorder %s6008_s22, 0  ;;  %s6025_s2 = sld [smem:[#allocation50_spill]] }
 0x1b2   : > { %s805_s1 = scalar_lea.vmem [#allocation7], %s5268_s18 }
 0x1b3   : > { %4205 = dma.hbm_to_vmem [thread:$0]  (!%p6024_p7), %s5459_s3, 128, %s5463_s10, %s759_s0  }
 0x1b4   : > { %s812_s8 = sshll.u32 %s805_s1, 4  ;;  %s813_s8 = int_to_ptr.vmem [resolvable:$true] %s812_s8 }
 0x1b7   : > { %s5493_s19 = scalar_lea.hbm %s6025_s2, %s3612_s4  ;;  %s4757_s10 = scalar_lea.hbm %s6025_s2, 32 }
 0x1b8   : > { %s4752_s7 = scalar_lea.hbm %s5493_s19, 16  ;;  %p4758_p4 = scmp.lt.u32.totalorder %s5493_s19, %s6025_s2 }
 0x1b9   : > { %p4753_p11 = scmp.ne.s32.totalorder %s5493_s19, %s4752_s7  ;;  %p4759_p10 = scmp.lt.u32.totalorder %s4757_s10, %s4752_s7 }
 0x1ba   : > { %p4761_p0 = scmp.lt.u32.totalorder %s4752_s7, %s5493_s19 }
 0x1bb   : > { %p4755_p12 = pnand %p4753_p11, %p6023_p6  ;;  %p4760_p3 = por %p4759_p10, %p4758_p4 }
 0x1bd   : > { %p4756_p2 = pneg %p4755_p12  ;;  %p4762_p5 = por %p4761_p0, %p4760_p3 }
 0x1bf   : > { %p4763_p9 = pnand %p4762_p5, %p4756_p2 }
 0x1c1   : > { %4766 = shalt.err (!%p4763_p9)
}
 0x1c2   : > { %s4767_s5 = scalar_lea.vmem %s813_s8, 16  ;;  %s4934_s24 = smov [#allocation7]  }
 0x1c3   : > { %p4768_p8 = scmp.ne.s32.totalorder %s813_s8, %s4767_s5  ;;  %s4772_s29 = sshll.u32 %s4934_s24, 4  ;;  %s4773_s29 = int_to_ptr.vmem [resolvable:$false] %s4772_s29 }
 0x1c4   : > { %s4774_s21 = scalar_lea.vmem %s4773_s29, 32  ;;  %p4775_p11 = scmp.lt.s32.totalorder %s813_s8, %s4773_s29 }
 0x1c5   : > { %p4770_p13 = pnand %p4768_p8, %p6023_p6  ;;  %p4776_p12 = scmp.lt.s32.totalorder %s4774_s21, %s4767_s5 }
 0x1c7   : > { %p4771_p1 = pneg %p4770_p13  ;;  %p4777_p7 = por %p4776_p12, %p4775_p11 }
 0x1c9   : > { %p4778_p4 = pnand %p4777_p7, %p4771_p1 }
 0x1cb   : > { %4781 = shalt.err (!%p4778_p4)
}
 0x1cc   : > { %p6026_p10 = scmp.ne.s32.totalorder %s6008_s22, 0  ;;  %s6027_s7 = sld [smem:[#allocation51_spill]] }
 0x1cd   : > { %s822_s3 = scalar_lea.vmem [#allocation8], %s5268_s18  ;;  %s6028_s0 = sand.u32 1, %s4914_s30  }
 0x1ce   : > { %4211 = dma.hbm_to_vmem [thread:$0]  (!%p6026_p10), %s5493_s19, 16, %s813_s8, %s5298_s9  }
 0x1cf   : > { %s829_s10 = sshll.u32 %s822_s3, 4  ;;  %s820_s27 = scalar_lea.sflag [#allocation9], %s6028_s0  ;;  %s830_s10 = int_to_ptr.vmem [resolvable:$true] %s829_s10 }
 0x1d2   : > { %s5519_s17 = scalar_lea.hbm %s6027_s7, %s3612_s4  ;;  %s4787_s8 = scalar_lea.hbm %s6027_s7, 32 }
 0x1d3   : > { %s4782_s5 = scalar_lea.hbm %s5519_s17, 16  ;;  %p4788_p0 = scmp.lt.u32.totalorder %s5519_s17, %s6027_s7 }
 0x1d4   : > { %p4783_p7 = scmp.ne.s32.totalorder %s5519_s17, %s4782_s5  ;;  %p4789_p5 = scmp.lt.u32.totalorder %s4787_s8, %s4782_s5 }
 0x1d5   : > { %p4791_p8 = scmp.lt.u32.totalorder %s4782_s5, %s5519_s17 }
 0x1d6   : > { %p4785_p2 = pnand %p4783_p7, %p6023_p6  ;;  %p4790_p9 = por %p4789_p5, %p4788_p0 }
 0x1d8   : > { %p4786_p3 = pneg %p4785_p2  ;;  %p4792_p13 = por %p4791_p8, %p4790_p9 }
 0x1da   : > { %p4793_p1 = pnand %p4792_p13, %p4786_p3 }
 0x1dc   : > { %4796 = shalt.err (!%p4793_p1)
}
 0x1dd   : > { %s4797_s18 = scalar_lea.vmem %s830_s10, 16  ;;  %s4935_s29 = smov [#allocation8]  }
 0x1de   : > { %p4798_p11 = scmp.ne.s32.totalorder %s830_s10, %s4797_s18  ;;  %s4802_s21 = sshll.u32 %s4935_s29, 4  ;;  %s4803_s21 = int_to_ptr.vmem [resolvable:$false] %s4802_s21 }
 0x1df   : > { %s4804_s6 = scalar_lea.vmem %s4803_s21, 32  ;;  %p4805_p7 = scmp.lt.s32.totalorder %s830_s10, %s4803_s21 }
 0x1e0   : > { %p4800_p12 = pnand %p4798_p11, %p6023_p6  ;;  %p4806_p2 = scmp.lt.s32.totalorder %s4804_s6, %s4797_s18 }
 0x1e2   : > { %p4801_p4 = pneg %p4800_p12  ;;  %p4807_p10 = por %p4806_p2, %p4805_p7 }
 0x1e4   : > { %p4808_p0 = pnand %p4807_p10, %p4801_p4 }
 0x1e6   : > { %4811 = shalt.err (!%p4808_p0)
}
 0x1e7   : > { %p6029_p5 = scmp.ne.s32.totalorder %s6008_s22, 0  ;;  %s6030_s1 = sld [smem:[#allocation42_spill]] }
 0x1e9   : > { %4214 = dma.hbm_to_vmem [thread:$0]  (!%p6029_p5), %s5519_s17, 16, %s830_s10, %s820_s27  }
 0x1ed   : > { %p6031_p3 = scmp.ne.s32.totalorder %s6030_s1, 0 }
 0x1ee   : > { %s5544_s15 = sand.u32 (!%p6031_p3), 1, %s4906_s28   ;;  %p6032_p6 = scmp.ne.s32.totalorder (!%p6031_p3), %s6004_s20, 0 }
 0x1ef   : > { %838 = sbr.rel (%p6031_p3) target bundleno = 5614 (0x15ee), region = 108  ;;  %s3615_s3 = sshll.u32 (!%p6031_p3), %s5544_s15, 3 }
 0x1f0   : > { %s841_s0 = scalar_lea.sflag (!%p6031_p3), [#allocation3], %s5544_s15  ;;  %s5548_s5 = scalar_lea.vmem (!%p6031_p3), [#allocation2], %s3615_s3 }
 0x1f6   : > { %4857 = dma.done.wait (%p6032_p6), %s841_s0, 128  }
 0x1f7   : > { %4859 = vsyncadd (%p6032_p6), %s841_s0, 4294967168  ;;  %s849_s22 = sand.u32 1, %s5077_s23   ;;  %s5555_s10 = scalar_lea.vmem [#allocation5], %s3615_s3 }
 0x1f8   : > { %s850_s17 = scalar_lea.sflag [#allocation6], %s849_s22 }
 0x1f9   : > { %4861 = dma.done.wait (%p6032_p6), %s850_s17, 144  }
 0x1fa   : > { %4863 = vsyncadd (%p6032_p6), %s850_s17, 4294967152  ;;  %s861_s27 = scalar_lea.vmem [#allocation7], %s5544_s15  ;;  %s867_s9 = scalar_lea.sflag [#allocation9], %s849_s22 }
 0x1fb   : > { %s869_s19 = scalar_lea.vmem [#allocation8], %s5544_s15 }
 0x1fc   : > { %4865 = dma.done.wait (%p6032_p6), %s867_s9, 16  }
 0x1fd   : > { %4867 = vsyncadd (%p6032_p6), %s867_s9, 4294967280  ;;  %p6033_p10 = scmp.eq.s32.totalorder %s5077_s23, 0 }
 0x1ff   : > { %4869 = dma.done.wait (%p6033_p10), [#allocation9], 256   ;;  %p6034_p9 = pmov %p6033_p10 }
 0x201   : > { %4871 = vsyncadd (%p6034_p9), [#allocation9], 4294967040  ;;  %p6035_p8 = pmov %p6034_p9 }
 0x203   : > { %4873 = dma.done.wait (%p6035_p8), [#allocation12], 144   ;;  %p6036_p13 = pmov %p6035_p8 }
 0x204   : > { %p6037_p1 = pmov %p6035_p8 }
 0x205   : > { %4875 = vsyncadd (%p6036_p13), [#allocation12], 4294967152 }
 0x206   : > { %4877 = dma.done.wait (%p6037_p1), [#allocation15], 48   ;;  %p6038_p11 = pmov %p6037_p1 }
 0x207   : > { %p6039_p12 = pmov %p6037_p1 }
 0x208   : > { %4879 = vsyncadd (%p6038_p11), [#allocation15], 4294967248 }
 0x209   : > { %4881 = dma.done.wait (%p6039_p12), [#allocation18], 544   ;;  %p6040_p4 = pmov %p6037_p1 }
 0x20a   : > { %p6041_p7 = pmov %p6037_p1 }
 0x20b   : > { %4883 = vsyncadd (%p6040_p4), [#allocation18], 4294966752 }
 0x20c   : > { %4885 = dma.done.wait (%p6041_p7), [#allocation21], 544   ;;  %p6042_p2 = pmov %p6037_p1 }
 0x20d   : > { %p6043_p0 = pmov %p6037_p1 }
 0x20e   : > { %4887 = vsyncadd (%p6042_p2), [#allocation21], 4294966752 }
 0x20f   : > { %4889 = dma.done.wait (%p6043_p0), [#allocation24], 544   ;;  %p6044_p5 = pmov %p6043_p0 }
 0x210   : > { %p6045_p3 = pmov %p6043_p0 }
 0x211   : > { %4891 = vsyncadd (%p6044_p5), [#allocation24], 4294966752 }
 0x212   : > { %4893 = dma.done.wait (%p6045_p3), [#allocation27], 512   ;;  %p6046_p6 = pmov %p6043_p0 }
 0x213   : > { %p1001_p10 = scmp.lt.s32.totalorder %s5077_s23, 1  ;;  %v4936_v0 = vmov 0.0   ;;  %vm4937_vm0 = vmmov 0   ;;  %v4297_v1 = vld [vmem:[#allocation10] sm:$0xff]   ;;  %s6047_s18 = sld [smem:[#allocation46_spill]]  ;;  %v4298_v2 = vld [vmem:[#allocation10 + $0x8] sm:$0xff]  }
 0x214   : > { %4895 = vsyncadd (%p6046_p6), [#allocation27], 4294966784  ;;  %3855 = vmatprep.subr.bf16.mxu0 %v4936_v0  ;;  %3863 = vmatprep.subr.bf16.mxu1 %v4936_v0  ;;  %v4299_v3 = vld [vmem:[#allocation13] sm:$0xff]   ;;  %vm1045_vm1 = vcmask 261120   ;;  %v1090_v6 = vld [vmem:[%s5548_s5] sm:$0xff]  ;;  %vm1107_vm2 = vcmask 130048  }
 0x215   : > { %3859 = vmatprep.mubr.msk.bf16.mxu0 %vm4937_vm0, %v4936_v0  ;;  %3865 = vmatprep.mubr.msk.bf16.mxu1 %vm4937_vm0, %v4936_v0  ;;  %s5603_s20 = scalar_select %p1001_p10, %s5077_s23, 1  ;;  %v1093_v8 = vpack.c.bf16 %v1090_v6, %v1090_v6  ;;  %v3637_v13 = vld [vmem:[#allocation14] ss:$0 sm:$0xff]  ;;  %v3633_v16 = vld [vmem:[#allocation11] ss:$0 sm:$0xff]  ;;  %vm1384_vm3 = vcmask 1043456  }
 0x216   : > { %3856 = vmatpush3.bf16.msra.mxu0 %v4297_v1  ;;  %3864 = vmatpush3.bf16.msra.mxu1 %v4299_v3  ;;  %s6048_s1 = sld [smem:[#allocation56_spill]]  ;;  %s6049_s22 = sld [smem:[#allocation57_spill]]  ;;  %v3640_v28 = vld [vmem:[#allocation16] ss:$0 sm:$0xff]  ;;  %v1015_v41 = vld [vmem:[%s5555_s10] sm:$0xff]  ;;  %v4304_v49 = vld [vmem:[#allocation25] sm:$0xff]  }
 0x217   : > { %s3750_s8 = sshll.u32 %s5603_s20, 4  ;;  %3857 = vmatprep.subr.bf16.mxu0 %v4936_v0  ;;  %v5644_v48 = vpack.c.bf16 %v1015_v41, %v1015_v41  ;;  %vm1380_vm4 = vcmask 64512   ;;  %v4305_v52 = vld [vmem:[#allocation25 + $0x8] sm:$0xff]   ;;  %v3645_v53 = vld [vmem:[#allocation17] ss:$0 sm:$0xff]  ;;  %s4106_s20 = smul.u32 384, %s5077_s23 }
 0x218   : > { %s6053_s0 = sld [smem:[#allocation65_spill]]  ;;  %s3309_s23 = scalar_lea.sflag [#allocation4], %s5544_s15 }
 0x219   : > { %s1005_s29 = scalar_lea.vmem %s6047_s18, %s3750_s8  ;;  %3866 = vmatmul.mubr.msk.bf16.vlgmr.msra.gmra.mrb[0].mxu1 %vm1107_vm2, %v1093_v8  ;;  %s4105_s18 = smul.u32 24, %s5544_s15 }
 0x21a   : > { %v1019_v4 = vld [vmem:[%s1005_s29] sm:$0xff]  ;;  %v1020_v5 = vld [vmem:[%s1005_s29 + $0x8] sm:$0xff]  ;;  %3858 = vmatpush3.bf16.msra.mxu0 %v4298_v2  ;;  %s6050_s29 = sld [smem:[#allocation48_spill]]  ;;  %p6054_p8 = scmp.ne.s32.totalorder %s6005_s26, 0 }
 0x21b   : > { %v1025_v7 = vpack.c.bf16 %v1020_v5, %v1019_v4  ;;  %s1000_s10 = scalar_lea.vmem [#allocation28], %s4105_s18  ;;  %s4938_s9 = smov [#allocation28]  }
 0x21c   : > { %v4300_v9 = vld [vmem:[%s6048_s1] sm:$0xff]   ;;  %v4302_v11 = vld [vmem:[%s6048_s1 + $0x8] sm:$0xff]   ;;  %s4816_s4 = sshll.u32 %s4938_s9, 4  ;;  %s4817_s4 = int_to_ptr.vmem [resolvable:$false] %s4816_s4 }
 0x21d   : > { %3860 = vmatmul.mubr.msk.bf16.vlgmr.msra.gmra.mrb[0].mxu0 %vm1045_vm1, %v1025_v7  ;;  %v4301_v10 = vld [vmem:[%s6049_s22] sm:$0xff]   ;;  %3869 = vmatprep.subr.bf16.mxu1 %v4300_v9  ;;  %v4303_v12 = vld [vmem:[%s6049_s22 + $0x8] sm:$0xff]   ;;  %s4818_s24 = scalar_lea.vmem %s4817_s4, 768 }
 0x21e   : > { %3877 = vmatprep.subr.bf16.mxu0 %v4301_v10  ;;  %3870 = vmatpush3.bf16.msra.mxu1 %v4300_v9  ;;  %s5860_s5 = scalar_lea.hbm %s6053_s0, %s4106_s20 }
 0x21f   : > { %3878 = vmatpush3.bf16.msra.mxu0 %v4301_v10  ;;  %3871 = vmatprep.subr.bf16.mxu1 %v4302_v11 }
 0x220   : > { %3879 = vmatprep.subr.bf16.mxu0 %v4303_v12  ;;  %s1010_s21 = scalar_lea.vmem %s6050_s29, %s3750_s8  ;;  %s6052_s8 = sld [smem:[#allocation64_spill]] }
 0x221   : > { %v1012_v43 = vld [vmem:[%s1010_s21] sm:$0xff]  ;;  %v1013_v44 = vld [vmem:[%s1010_s21 + $0x8] sm:$0xff] }
 0x222   : > { %3872 = vmatpush3.bf16.msra.mxu1 %v4302_v11  ;;  %v5646_v51 = vpack.c.bf16 %v1013_v44, %v1012_v43 }
 0x223   : > { %3880 = vmatpush3.bf16.msra.mxu0 %v4303_v12  ;;  %3885 = vmatprep.subr.bf16.mxu1 %v4936_v0  ;;  %v4306_v12 = vld [vmem:[#allocation22] sm:$0xff]  }
 0x224   : > { %3891 = vmatprep.subr.bf16.mxu0 %v4936_v0 }
 0x2ec   : > { %v1145_v14 = vpop.f32.mrb[0].mxu1 }
 0x2ed   : > { %v3867_v15 = vpop.f32.mrb[1].mxu1  ;;  %v1146_v18 = vadd.f32 %v3637_v13, %v1145_v14  ;;  %v4307_v13 = vld [vmem:[#allocation19] sm:$0xff]  }
 0x2ee   : > { %v1148_v19 = vpop.f32.mrb[2].mxu1 }
 0x2ef   : > { %v3868_v21 = vpop.f32.mrb[3].mxu1  ;;  %v1189_v26 = vpack.c.bf16 %v1146_v18, %v1146_v18 }
 0x2f0   : > { %v1083_v17 = vpop.f32.mrb[0].mxu0  ;;  %v4309_v21 = vld [vmem:[#allocation19 + $0x8] sm:$0xff]  }
 0x2f1   : > { %v3861_v20 = vpop.f32.mrb[1].mxu0  ;;  %v1084_v23 = vadd.f32 %v3633_v16, %v1083_v17  ;;  %v4308_v17 = vld [vmem:[#allocation22 + $0x8] sm:$0xff]  }
 0x2f2   : > { %v1086_v22 = vpop.f32.mrb[2].mxu0 }
 0x2f3   : > { %v1087_v24 = vadd.f32 %v3633_v16, %v1086_v22  ;;  %v3862_v25 = vpop.f32.mrb[3].mxu0 }
 0x2f5   : > { %v1188_v27 = vpack.c.bf16 %v1087_v24, %v1084_v23 }
 0x2f7   : > { %3873 = vmatprep.mubr.msk.bf16.mxu1 %vm1045_vm1, %v1188_v27  ;;  %3881 = vmatprep.mubr.msk.bf16.mxu0 %vm1045_vm1, %v1188_v27 }
 0x2f8   : > { %3874 = vmatmul.mubr.msk.bf16.vlgmr.msra.gmra.mrb[4].mxu1 %vm1045_vm1, %v1189_v26  ;;  %3882 = vmatmul.mubr.msk.bf16.vlgmr.msra.gmra.mrb[4].mxu0 %vm1045_vm1, %v1189_v26 }
 0x2f9   : > { %3893 = vmatprep.mubr.msk.bf16.mxu0 %vm4937_vm0, %v4936_v0  ;;  %3887 = vmatprep.mubr.msk.bf16.mxu1 %vm4937_vm0, %v4936_v0 }
 0x3cb   : > { %v3875_v29 = vpop.f32.mrb[4].mxu1  ;;  %v3883_v30 = vpop.f32.mrb[4].mxu0 }
 0x3cc   : > { %v1257_v31 = vadd.f32 %v3875_v29, %v3640_v28  ;;  %v1248_v32 = vpop.f32.mrb[5].mxu1  ;;  %v1317_v33 = vpop.f32.mrb[5].mxu0  ;;  %v1326_v54 = vadd.f32 %v3883_v30, %v3645_v53 }
 0x3cd   : > { %v1249_v34 = vadd.f32 %v3640_v28, %v1248_v32  ;;  %v3876_v35 = vpop.f32.mrb[6].mxu1  ;;  %v3884_v36 = vpop.f32.mrb[6].mxu0  ;;  %v1318_v55 = vadd.f32 %v3645_v53, %v1317_v33  ;;  %v3658_v33 = vld [vmem:[#allocation20] ss:$0 sm:$0xff] }
 0x3ce   : > { %v1264_v37 = vmax.f32 %v1257_v31, 0.0  ;;  %v1251_v38 = vpop.f32.mrb[7].mxu1  ;;  %v1320_v39 = vpop.f32.mrb[7].mxu0  ;;  %v1333_v56 = vmax.f32 %v1326_v54, 0.0  ;;  %v3663_v54 = vld [vmem:[#allocation23] ss:$0 sm:$0xff] }
 0x3cf   : > { %v1252_v40 = vadd.f32 %v3640_v28, %v1251_v38  ;;  %v1262_v45 = vmax.f32 %v1249_v34, 0.0  ;;  %v1321_v57 = vadd.f32 %v3645_v53, %v1320_v39  ;;  %v1331_v59 = vmax.f32 %v1318_v55, 0.0  ;;  %v4311_v53 = vld [vmem:[#allocation26 + $0x8] sm:$0xff]  }
 0x3d0   : > { %v1379_v42 = vpack.c.bf16 %v1264_v37, %v1264_v37 }
 0x3d1   : > { %v1263_v46 = vmax.f32 %v1252_v40, 0.0  ;;  %v1332_v1 = vmax.f32 %v1321_v57, 0.0 }
 0x3d2   : > { %v1386_v47 = vsel %vm1384_vm3, %v1379_v42, 0 }
 0x3d3   : > { %v1334_v50 = vpack.c.bf16 %v1263_v46, %v1262_v45  ;;  %3892 = vmatpush3.bf16.msra.mxu0 %v1386_v47 }
 0x3d4   : > { %3905 = vmatprep.subr.bf16.mxu0 %v4936_v0 }
 0x3d5   : > { %3886 = vmatpush3.bf16.msra.mxu1 %v1334_v50 }
 0x3d6   : > { %3894 = vmatmul.mubr.msk.bf16.vlgmr.msra.gmra.mrb[8].mxu0 %vm1380_vm4, %v5644_v48  ;;  %3897 = vmatprep.subr.bf16.mxu1 %v4304_v49 }
 0x3d7   : > { %3907 = vmatprep.mubr.msk.bf16.mxu0 %vm4937_vm0, %v4936_v0 }
 0x3d8   : > { %3888 = vmatmul.mubr.msk.bf16.vlgmr.msra.gmra.mrb[8].mxu1 %vm1107_vm2, %v5646_v51 }
 0x3d9   : > { %3898 = vmatpush3.bf16.msra.mxu1 %v4304_v49 }
 0x3da   : > { %3899 = vmatprep.subr.bf16.mxu1 %v4305_v52 }
 0x3dd   : > { %3900 = vmatpush3.bf16.msra.mxu1 %v4305_v52  ;;  %v4310_v52 = vld [vmem:[#allocation26] sm:$0xff]  }
 0x3de   : > { %3911 = vmatprep.subr.bf16.mxu1 %v4936_v0 }
 0x4a9   : > { %v1422_v58 = vpop.f32.mrb[8].mxu0 }
 0x4aa   : > { %v1423_v60 = vadd.f32 %v1422_v58, %v1333_v56  ;;  %v3895_v61 = vpop.f32.mrb[9].mxu0 }
 0x4ab   : > { %v1372_v62 = vpop.f32.mrb[8].mxu1  ;;  %v1425_v63 = vpop.f32.mrb[10].mxu0 }
 0x4ac   : > { %v1373_v2 = vadd.f32 %v1372_v62, %v1331_v59  ;;  %v3889_v3 = vpop.f32.mrb[9].mxu1  ;;  %v3896_v4 = vpop.f32.mrb[11].mxu0  ;;  %v1429_v8 = vpack.c.bf16 %v1423_v60, %v1423_v60 }
 0x4ad   : > { %v1375_v5 = vpop.f32.mrb[10].mxu1 }
 0x4ae   : > { %v1376_v6 = vadd.f32 %v1375_v5, %v1332_v1  ;;  %v3890_v7 = vpop.f32.mrb[11].mxu1  ;;  %v1446_v11 = vsel %vm1045_vm1, %v1429_v8, 0 }
 0x4b0   : > { %v1428_v9 = vpack.c.bf16 %v1376_v6, %v1373_v2 }
 0x4b2   : > { %3901 = vmatprep.mubr.msk.bf16.mxu1 %vm1045_vm1, %v1428_v9  ;;  %v1443_v10 = vsel %vm1045_vm1, %v1428_v9, 0 }
 0x4b3   : > { %3902 = vmatmul.mubr.msk.bf16.vlgmr.msra.gmra.mrb[12].mxu1 %vm1045_vm1, %v1429_v8  ;;  %3906 = vmatpush3.bf16.xpose.msra.mxu0 %v1443_v10 }
 0x4b4   : > { %3912 = vmatpush3.bf16.xpose.msra.mxu1 %v1446_v11  ;;  %3913 = vmatprep.mubr.msk.bf16.mxu1 %vm4937_vm0, %v4936_v0 }
 0x4b5   : > { %3925 = vmatprep.subr.bf16.mxu1 %v4306_v12  ;;  %3917 = vmatprep.subr.bf16.mxu0 %v4307_v13 }
 0x586   : > { %v3903_v14 = vpop.f32.mrb[12].mxu1 }
 0x587   : > { %v1541_v15 = vpack.c.bf16 %v3903_v14, %v3903_v14  ;;  %v1482_v16 = vpop.f32.mrb[13].mxu1 }
 0x588   : > { %v3904_v18 = vpop.f32.mrb[14].mxu1 }
 0x589   : > { %v1485_v19 = vpop.f32.mrb[15].mxu1  ;;  %3914 = vmatmul.mubr.msk.bf16.vlgmr.msra.gmra.mrb[16].mxu1 %vm1045_vm1, %v1541_v15  ;;  %v1957_v18 = vlaneseq }
 0x58a   : > { %v1496_v20 = vpack.c.bf16 %v1485_v19, %v1482_v16  ;;  %3926 = vmatpush3.bf16.msra.mxu1 %v4306_v12  ;;  %3929 = vmatprep.mubr.msk.bf16.mxu1 %vm1045_vm1, %v1428_v9 }
 0x58b   : > { %3927 = vmatprep.subr.bf16.mxu1 %v4308_v17  ;;  %v1958_v19 = vshrl.u32 %v1957_v18, 7 }
 0x58c   : > { %3908 = vmatmul.mubr.msk.bf16.vlgmr.msra.gmra.mrb[12].mxu0 %vm1045_vm1, %v1496_v20  ;;  %v1018_v20 = vld [vmem:[%s869_s19] sm:$0x1]  ;;  %s6051_s19 = sld [smem:[#allocation63_spill]] }
 0x58d   : > { %3918 = vmatpush3.bf16.msra.mxu0 %v4307_v13  ;;  %3921 = vmatprep.mubr.msk.bf16.mxu0 %vm1045_vm1, %v1428_v9 }
 0x58e   : > { %3928 = vmatpush3.bf16.msra.mxu1 %v4308_v17  ;;  %3919 = vmatprep.subr.bf16.mxu0 %v4309_v21 }
 0x58f   : > { %3939 = vmatprep.subr.bf16.mxu1 %v4936_v0 }
 0x591   : > { %3920 = vmatpush3.bf16.msra.mxu0 %v4309_v21  ;;  %3930 = vmatmul.mubr.msk.bf16.vlgmr.msra.gmra.mrb[20].mxu1 %vm1045_vm1, %v1429_v8  ;;  %v1955_v21 = vmul.f32 1e+09, %v1018_v20 }
 0x592   : > { %3933 = vmatprep.subr.bf16.mxu0 %v4936_v0  ;;  %3941 = vmatprep.mubr.msk.bf16.mxu1 %vm4937_vm0, %v4936_v0 }
 0x594   : > { %3922 = vmatmul.mubr.msk.bf16.vlgmr.msra.gmra.mrb[16].mxu0 %vm1045_vm1, %v1429_v8 }
 0x595   : > { %3935 = vmatprep.mubr.msk.bf16.mxu0 %vm4937_vm0, %v4936_v0 }
 0x65c   : > { %v1579_v22 = vpop.f32.mrb[16].mxu1 }
 0x65d   : > { %v3915_v23 = vpop.f32.mrb[17].mxu1  ;;  %v1769_v50 = vpack.c.bf16 %v1579_v22, %v1579_v22  ;;  %v1959_v22 = vsub.s32 0, %v1958_v19 }
 0x65e   : > { %v1582_v24 = vpop.f32.mrb[18].mxu1 }
 0x65f   : > { %v1534_v25 = vpop.f32.mrb[12].mxu0  ;;  %v3916_v26 = vpop.f32.mrb[19].mxu1  ;;  %v5704_v23 = vrot.slane %v1955_v21, %v1959_v22 }
 0x660   : > { %v3909_v27 = vpop.f32.mrb[13].mxu0 }
 0x661   : > { %v1537_v28 = vpop.f32.mrb[14].mxu0 }
 0x662   : > { %v1723_v29 = vpack.c.bf16 %v1537_v28, %v1534_v25  ;;  %v3910_v30 = vpop.f32.mrb[15].mxu0 }
 0x664   : > { %v3931_v31 = vpop.f32.mrb[20].mxu1 }
 0x665   : > { %v1706_v32 = vpop.f32.mrb[21].mxu1  ;;  %v1715_v55 = vadd.f32 %v3931_v31, %v3663_v54 }
 0x666   : > { %v3932_v34 = vpop.f32.mrb[22].mxu1  ;;  %v1707_v56 = vadd.f32 %v3663_v54, %v1706_v32  ;;  %v1017_v32 = vld [vmem:[%s861_s27] sm:$0x1]  ;;  %s3322_s27 = sshll.u32 %s1000_s10, 4  ;;  %s5853_s27 = int_to_ptr.vmem [resolvable:$true] %s3322_s27 }
 0x667   : > { %v3923_v35 = vpop.f32.mrb[16].mxu0  ;;  %v1709_v36 = vpop.f32.mrb[23].mxu1  ;;  %v1722_v57 = vmax.f32 %v1715_v55, 0.0  ;;  %s4812_s17 = scalar_lea.vmem %s5853_s27, 384  ;;  %p4819_p11 = scmp.lt.s32.totalorder %s5853_s27, %s4817_s4 }
 0x668   : > { %v1646_v37 = vadd.f32 %v3923_v35, %v3658_v33  ;;  %v1637_v38 = vpop.f32.mrb[17].mxu0  ;;  %v1710_v58 = vadd.f32 %v3663_v54, %v1709_v36  ;;  %v1720_v60 = vmax.f32 %v1707_v56, 0.0  ;;  %p4813_p9 = scmp.ne.s32.totalorder %s5853_s27, %s4812_s17  ;;  %p4820_p12 = scmp.lt.s32.totalorder %s4818_s24, %s4812_s17 }
 0x669   : > { %v1638_v39 = vadd.f32 %v3658_v33, %v1637_v38  ;;  %v3924_v40 = vpop.f32.mrb[18].mxu0 }
 0x66a   : > { %v1653_v41 = vmax.f32 %v1646_v37, 0.0  ;;  %v1640_v42 = vpop.f32.mrb[19].mxu0  ;;  %v1721_v2 = vmax.f32 %v1710_v58, 0.0  ;;  %p4814_p13 = pnand %p4813_p9, %p6054_p8  ;;  %p4821_p4 = por %p4820_p12, %p4819_p11 }
 0x66b   : > { %v1641_v43 = vadd.f32 %v3658_v33, %v1640_v42  ;;  %v1651_v45 = vmax.f32 %v1638_v39, 0.0  ;;  %v1986_v33 = vmul.f32 1e+09, %v1017_v32 }
 0x66c   : > { %v1770_v44 = vpack.c.bf16 %v1653_v41, %v1653_v41  ;;  %p4815_p1 = pneg %p4814_p13 }
 0x66d   : > { %v1652_v46 = vmax.f32 %v1641_v43, 0.0  ;;  %v5712_v34 = vrot.slane %v1986_v33, %v1959_v22  ;;  %v4317_v22 = vld [vmem:[%s6049_s22 + $0x10] sm:$0xff]  }
 0x66e   : > { %v1775_v47 = vsel %vm1384_vm3, %v1770_v44, 0  ;;  %p4822_p7 = pnand %p4821_p4, %p4815_p1 }
 0x66f   : > { %v1724_v49 = vpack.c.bf16 %v1652_v46, %v1651_v45  ;;  %3940 = vmatpush3.bf16.msra.mxu1 %v1775_v47 }
 0x670   : > { %3953 = vmatprep.subr.bf16.mxu1 %v4936_v0 }
 0x671   : > { %3934 = vmatpush3.bf16.msra.mxu0 %v1724_v49 }
 0x672   : > { %3942 = vmatmul.mubr.msk.bf16.vlgmr.msra.gmra.mrb[24].mxu1 %vm1380_vm4, %v1769_v50  ;;  %3945 = vmatprep.subr.bf16.mxu0 %v4936_v0 }
 0x673   : > { %3955 = vmatprep.mubr.msk.bf16.mxu1 %vm4937_vm0, %v4936_v0 }
 0x674   : > { %3936 = vmatmul.mubr.msk.bf16.vlgmr.msra.gmra.mrb[20].mxu0 %vm1107_vm2, %v1723_v29 }
 0x675   : > { %3949 = vmatprep.mubr.msk.bf16.mxu0 %vm4937_vm0, %v4936_v0  ;;  %3946 = vmatpush3.bf16.msra.mxu0 %v4310_v52 }
 0x676   : > { %3947 = vmatprep.subr.bf16.mxu0 %v4936_v0 }
 0x679   : > { %3948 = vmatpush3.bf16.msra.mxu0 %v4311_v53 }
 0x67a   : > { %3959 = vmatprep.subr.bf16.mxu0 %v4936_v0 }
 0x745   : > { %v1811_v59 = vpop.f32.mrb[24].mxu1 }
 0x746   : > { %v1812_v61 = vadd.f32 %v1811_v59, %v1722_v57  ;;  %v3943_v62 = vpop.f32.mrb[25].mxu1 }
 0x747   : > { %v1762_v63 = vpop.f32.mrb[20].mxu0  ;;  %v1814_v1 = vpop.f32.mrb[26].mxu1 }
 0x748   : > { %v5685_v3 = vpack.c.bf16 %v1812_v61, %v1812_v61  ;;  %v1763_v4 = vadd.f32 %v1762_v63, %v1720_v60  ;;  %v3937_v5 = vpop.f32.mrb[21].mxu0  ;;  %v3944_v6 = vpop.f32.mrb[27].mxu1  ;;  %v4312_v61 = vld [vmem:[%s6051_s19] sm:$0xff]   ;;  %v4314_v63 = vld [vmem:[%s6051_s19 + $0x10] sm:$0xff]   ;;  %v4315_v1 = vld [vmem:[%s6051_s19 + $0x18] sm:$0xff]  }
 0x749   : > { %v1765_v7 = vpop.f32.mrb[22].mxu0 }
 0x74a   : > { %v1766_v8 = vadd.f32 %v1765_v7, %v1721_v2  ;;  %v3938_v9 = vpop.f32.mrb[23].mxu0  ;;  %v1880_v10 = vsel %vm1045_vm1, %v5685_v3, 0  ;;  %v2009_v12 = vsel %vm1384_vm3, %v5685_v3, 0  ;;  %v4313_v7 = vld [vmem:[%s6051_s19 + $0x8] sm:$0xff]  }
 0x74b   : > { %3954 = vmatpush3.bf16.xpose.msra.mxu1 %v1880_v10 }
 0x74c   : > { %v5689_v11 = vpack.c.bf16 %v1766_v8, %v1763_v4  ;;  %3965 = vmatprep.subr.bf16.mxu1 %v4936_v0 }
 0x74e   : > { %3950 = vmatmul.mubr.msk.bf16.vlgmr.msra.gmra.mrb[24].mxu0 %vm1045_vm1, %v5689_v11 }
 0x74f   : > { %3960 = vmatpush3.bf16.msra.mxu0 %v2009_v12  ;;  %3961 = vmatprep.mubr.msk.bf16.mxu0 %vm4937_vm0, %v4936_v0 }
 0x750   : > { %3971 = vmatprep.subr.bf16.mxu0 %v4314_v63 }
 0x821   : > { %v1867_v13 = vpop.f32.mrb[24].mxu0 }
 0x822   : > { %v3951_v14 = vpop.f32.mrb[25].mxu0 }
 0x823   : > { %v1870_v15 = vpop.f32.mrb[26].mxu0 }
 0x824   : > { %v1874_v16 = vpack.c.bf16 %v1870_v15, %v1867_v13  ;;  %v3952_v17 = vpop.f32.mrb[27].mxu0 }
 0x826   : > { %3956 = vmatmul.mubr.msk.bf16.vlgmr.msra.gmra.mrb[28].mxu1 %vm1045_vm1, %v1874_v16 }
 0x827   : > { %3966 = vmatpush3.bf16.msra.mxu1 %v5689_v11  ;;  %3967 = vmatprep.mubr.msk.bf16.mxu1 %vm4937_vm0, %v4936_v0 }
 0x828   : > { %3979 = vmatprep.subr.bf16.mxu1 %v4312_v61 }
 0x8f9   : > { %v1916_v24 = vpop.f32.mrb[28].mxu1 }
 0x8fa   : > { %1923 = vxpose.xlu0.b32.start [1/2] (short) (narrow) %v1916_v24, 8  ;;  %v3957_v25 = vpop.f32.mrb[29].mxu1  ;;  %v1962_v26 = vsub.f32 %v1916_v24, %v5704_v23  ;;  %v4318_v24 = vld [vmem:[%s6048_s1 + $0x18] sm:$0xff]  }
 0x8fb   : > { %v1919_v27 = vpop.f32.mrb[30].mxu1  ;;  %v4319_v25 = vld [vmem:[%s6049_s22 + $0x18] sm:$0xff]  }
 0x8fc   : > { %v1963_v28 = vsub.f32 %v1919_v27, %v5704_v23  ;;  %v3958_v29 = vpop.f32.mrb[31].mxu1  ;;  %v1964_v30 = vsel %vm1380_vm4, %v1962_v26, -inf }
 0x8fd   : > { %1965 = vmax.xlane.f32.xlu1 %v1964_v30  ;;  %v3684_v29 = vld [vmem:[%s6052_s8] ss:$0 sm:$0xff] }
 0x8fe   : > { %1924 = vxpose.xlu0.b32.end [2/2] (short) (narrow) %v1919_v27, 8  ;;  %v1967_v31 = vsel %vm1380_vm4, %v1963_v28, -inf }
 0x901   : > { %1968 = vmax.xlane.f32.xlu1 %v1967_v31 }
 0x97a   : > { %v1939_v35 = vpop.trf.xlu0 }
 0x97b   : > { %v1993_v36 = vsub.f32 %v1939_v35, %v5712_v34 }
 0x97d   : > { %v1994_v37 = vsel %vm1107_vm2, %v1993_v36, -inf }
 0x97e   : > { %1995 = vmax.xlane.f32.xlu0 %v1994_v37 }
 0x98a   : > { %v1966_v38 = vpop.xlane.xlu1 %1965 }
 0x98b   : > { %v1970_v39 = vsub.f32 %v1962_v26, %v1966_v38 }
 0x98d   : > { %v1972_v40 = vmul.f32 1.442695, %v1970_v39 }
 0x98e   : > { %v1969_v41 = vpop.xlane.xlu1 %1968 }
 0x98f   : > { %4332 = vpow2.f32 %v1972_v40  ;;  %v1971_v42 = vsub.f32 %v1963_v28, %v1969_v41  ;;  %v3702_v40 = vld [vmem:[#allocation16 + $0x1] ss:$0 sm:$0xff] }
 0x991   : > { %v1974_v43 = vmul.f32 1.442695, %v1971_v42 }
 0x993   : > { %4334 = vpow2.f32 %v1974_v43 }
 0x999   : > { %v4333_v44 = vpop.eup %4332 }
 0x99a   : > { %v1976_v45 = vsel %vm1380_vm4, %v4333_v44, 0.0 }
 0x99b   : > { %1977 = vadd.xlane.f32.xlu1 %v1976_v45 }
 0x99d   : > { %v4335_v46 = vpop.eup %4334 }
 0x99e   : > { %v1979_v47 = vsel %vm1380_vm4, %v4335_v46, 0.0 }
 0x99f   : > { %1980 = vadd.xlane.f32.xlu1 %v1979_v47 }
 0xa0b   : > { %v1996_v49 = vpop.xlane.xlu0 %1995 }
 0xa0c   : > { %v1997_v50 = vsub.f32 %v1993_v36, %v1996_v49 }
 0xa0e   : > { %v1998_v52 = vmul.f32 1.442695, %v1997_v50 }
 0xa10   : > { %4336 = vpow2.f32 %v1998_v52 }
 0xa1a   : > { %v4337_v53 = vpop.eup %4336 }
 0xa1b   : > { %v2000_v54 = vsel %vm1107_vm2, %v4337_v53, 0.0 }
 0xa1c   : > { %2001 = vadd.xlane.f32.xlu1 %v2000_v54 }
 0xa28   : > { %v1978_v55 = vpop.xlane.xlu1 %1977 }
 0xa29   : > { %4338 = vrcp.f32 %v1978_v55 }
 0xa2c   : > { %v1981_v56 = vpop.xlane.xlu1 %1980 }
 0xa2d   : > { %4340 = vrcp.f32 %v1981_v56 }
 0xa33   : > { %v4339_v57 = vpop.eup %4338 }
 0xa34   : > { %v1984_v59 = vmul.f32 %v4339_v57, %v4333_v44 }
 0xa37   : > { %v4341_v58 = vpop.eup %4340 }
 0xa38   : > { %v1985_v60 = vmul.f32 %v4341_v58, %v4335_v46 }
 0xa3a   : > { %v2005_v62 = vpack.c.bf16 %v1985_v60, %v1984_v59  ;;  %v4320_v59 = vld [vmem:[#allocation25 + $0x10] sm:$0xff]  }
 0xa3c   : > { %3962 = vmatmul.mubr.msk.bf16.vlgmr.msra.gmra.mrb[28].mxu0 %vm1380_vm4, %v2005_v62  ;;  %v3707_v62 = vld [vmem:[#allocation17 + $0x1] ss:$0 sm:$0xff] }
 0xa3d   : > { %3972 = vmatpush3.bf16.msra.mxu0 %v4314_v63 }
 0xa3e   : > { %3973 = vmatprep.subr.bf16.mxu0 %v4315_v1 }
 0xa41   : > { %3974 = vmatpush3.bf16.msra.mxu0 %v4315_v1 }
 0xaa9   : > { %v2002_v2 = vpop.xlane.xlu1 %2001 }
 0xaaa   : > { %4342 = vrcp.f32 %v2002_v2 }
 0xab4   : > { %v4343_v4 = vpop.eup %4342 }
 0xab5   : > { %v2004_v5 = vmul.f32 %v4343_v4, %v4337_v53 }
 0xab7   : > { %v2052_v6 = vpack.c.bf16 %v2004_v5, %v2004_v5 }
 0xab9   : > { %3968 = vmatmul.mubr.msk.bf16.vlgmr.msra.gmra.mrb[32].mxu1 %vm1107_vm2, %v2052_v6 }
 0xaba   : > { %3980 = vmatpush3.bf16.msra.mxu1 %v4312_v61  ;;  %3983 = vmatprep.mubr.msk.bf16.mxu1 %vm1045_vm1, %v5689_v11  ;;  %v4321_v61 = vld [vmem:[#allocation25 + $0x18] sm:$0xff]  }
 0xabb   : > { %3981 = vmatprep.subr.bf16.mxu1 %v4313_v7 }
 0xabe   : > { %3982 = vmatpush3.bf16.msra.mxu1 %v4313_v7 }
 0xabf   : > { %3995 = vmatprep.subr.bf16.mxu1 %v4317_v22 }
 0xac1   : > { %3984 = vmatmul.mubr.msk.bf16.vlgmr.msra.gmra.mrb[36].mxu1 %vm1045_vm1, %v5685_v3  ;;  %v4316_v3 = vld [vmem:[%s6048_s1 + $0x10] sm:$0xff]  }
 0xac2   : > { %3987 = vmatprep.subr.bf16.mxu0 %v4316_v3  ;;  %3996 = vmatpush3.bf16.msra.mxu1 %v4317_v22 }
 0xac3   : > { %3997 = vmatprep.subr.bf16.mxu1 %v4319_v25 }
 0xac6   : > { %3998 = vmatpush3.bf16.msra.mxu1 %v4319_v25  ;;  %v4324_v25 = vld [vmem:[#allocation22 + $0x18] sm:$0xff]  }
 0xac7   : > { %4009 = vmatprep.subr.bf16.mxu1 %v4936_v0 }
 0xb0f   : > { %v2045_v8 = vpop.f32.mrb[28].mxu0 }
 0xb10   : > { %v3963_v9 = vpop.f32.mrb[29].mxu0 }
 0xb11   : > { %v2048_v10 = vpop.f32.mrb[30].mxu0 }
 0xb12   : > { %v2096_v12 = vpack.c.bf16 %v2048_v10, %v2045_v8  ;;  %v3964_v13 = vpop.f32.mrb[31].mxu0 }
 0xb14   : > { %3975 = vmatprep.mubr.msk.bf16.mxu0 %vm1045_vm1, %v2096_v12 }
 0xb8c   : > { %v2090_v14 = vpop.f32.mrb[32].mxu1 }
 0xb8d   : > { %v2097_v15 = vpack.c.bf16 %v2090_v14, %v2090_v14  ;;  %v3969_v16 = vpop.f32.mrb[33].mxu1 }
 0xb8e   : > { %v2093_v17 = vpop.f32.mrb[34].mxu1 }
 0xb8f   : > { %v3970_v18 = vpop.f32.mrb[35].mxu1  ;;  %3976 = vmatmul.mubr.msk.bf16.vlgmr.msra.gmra.mrb[32].mxu0 %vm1045_vm1, %v2097_v15 }
 0xb90   : > { %3988 = vmatpush3.bf16.msra.mxu0 %v4316_v3 }
 0xb91   : > { %3989 = vmatprep.subr.bf16.mxu0 %v4318_v24 }
 0xb94   : > { %v3985_v11 = vpop.f32.mrb[36].mxu1  ;;  %3990 = vmatpush3.bf16.msra.mxu0 %v4318_v24 }
 0xb95   : > { %v2210_v19 = vpop.f32.mrb[37].mxu1  ;;  %4003 = vmatprep.subr.bf16.mxu0 %v4936_v0 }
 0xb96   : > { %v3986_v20 = vpop.f32.mrb[38].mxu1 }
 0xb97   : > { %v2213_v21 = vpop.f32.mrb[39].mxu1  ;;  %v4322_v20 = vld [vmem:[#allocation22 + $0x10] sm:$0xff]  }
 0xc62   : > { %v3977_v26 = vpop.f32.mrb[32].mxu0 }
 0xc63   : > { %v2219_v27 = vadd.f32 %v3985_v11, %v3977_v26  ;;  %v2150_v28 = vpop.f32.mrb[33].mxu0 }
 0xc64   : > { %v2211_v30 = vadd.f32 %v2210_v19, %v2150_v28  ;;  %v3978_v31 = vpop.f32.mrb[34].mxu0 }
 0xc65   : > { %v2153_v32 = vpop.f32.mrb[35].mxu0  ;;  %v2232_v35 = vadd.f32 %v3684_v29, %v2219_v27 }
 0xc66   : > { %v2214_v33 = vadd.f32 %v2213_v21, %v2153_v32  ;;  %v2230_v36 = vadd.f32 %v3684_v29, %v2211_v30  ;;  %v4323_v21 = vld [vmem:[#allocation19 + $0x10] sm:$0xff]  }
 0xc67   : > { %v2283_v39 = vpack.c.bf16 %v2232_v35, %v2232_v35 }
 0xc68   : > { %v2231_v37 = vadd.f32 %v3684_v29, %v2214_v33  ;;  %v4325_v29 = vld [vmem:[#allocation19 + $0x18] sm:$0xff]  }
 0xc6a   : > { %v2282_v38 = vpack.c.bf16 %v2231_v37, %v2230_v36 }
 0xc6c   : > { %3991 = vmatprep.mubr.msk.bf16.mxu0 %vm1045_vm1, %v2282_v38  ;;  %3999 = vmatprep.mubr.msk.bf16.mxu1 %vm1045_vm1, %v2282_v38 }
 0xc6d   : > { %3992 = vmatmul.mubr.msk.bf16.vlgmr.msra.gmra.mrb[36].mxu0 %vm1045_vm1, %v2283_v39  ;;  %4000 = vmatmul.mubr.msk.bf16.vlgmr.msra.gmra.mrb[40].mxu1 %vm1045_vm1, %v2283_v39 }
 0xc6e   : > { %4011 = vmatprep.mubr.msk.bf16.mxu1 %vm4937_vm0, %v4936_v0  ;;  %4005 = vmatprep.mubr.msk.bf16.mxu0 %vm4937_vm0, %v4936_v0 }
 0xd40   : > { %v3993_v41 = vpop.f32.mrb[36].mxu0  ;;  %v4001_v42 = vpop.f32.mrb[40].mxu1 }
 0xd41   : > { %v2351_v43 = vadd.f32 %v3993_v41, %v3702_v40  ;;  %v2342_v44 = vpop.f32.mrb[37].mxu0  ;;  %v2411_v45 = vpop.f32.mrb[41].mxu1  ;;  %v2420_v63 = vadd.f32 %v4001_v42, %v3707_v62  ;;  %v3720_v42 = vld [vmem:[#allocation20 + $0x1] ss:$0 sm:$0xff] }
 0xd42   : > { %v2343_v46 = vadd.f32 %v3702_v40, %v2342_v44  ;;  %v3994_v47 = vpop.f32.mrb[38].mxu0  ;;  %v4002_v49 = vpop.f32.mrb[42].mxu1  ;;  %v2412_v1 = vadd.f32 %v3707_v62, %v2411_v45 }
 0xd43   : > { %v2358_v50 = vmax.f32 %v2351_v43, 0.0  ;;  %v2345_v52 = vpop.f32.mrb[39].mxu0  ;;  %v2414_v53 = vpop.f32.mrb[43].mxu1  ;;  %v2427_v2 = vmax.f32 %v2420_v63, 0.0  ;;  %v3725_v63 = vld [vmem:[#allocation23 + $0x1] ss:$0 sm:$0xff] }
 0xd44   : > { %v2346_v54 = vadd.f32 %v3702_v40, %v2345_v52  ;;  %v2356_v56 = vmax.f32 %v2343_v46, 0.0  ;;  %v2415_v4 = vadd.f32 %v3707_v62, %v2414_v53  ;;  %v4327_v62 = vld [vmem:[#allocation26 + $0x18] sm:$0xff]  }
 0xd45   : > { %v2470_v55 = vpack.c.bf16 %v2358_v50, %v2358_v50 }
 0xd46   : > { %v2357_v57 = vmax.f32 %v2346_v54, 0.0  ;;  %v2426_v10 = vmax.f32 %v2415_v4, 0.0 }
 0xd47   : > { %v2472_v58 = vsel %vm1384_vm3, %v2470_v55, 0 }
 0xd48   : > { %v2428_v60 = vpack.c.bf16 %v2357_v57, %v2356_v56  ;;  %4010 = vmatpush3.bf16.msra.mxu1 %v2472_v58 }
 0xd49   : > { %4023 = vmatprep.subr.bf16.mxu1 %v4936_v0 }
 0xd4a   : > { %4004 = vmatpush3.bf16.msra.mxu0 %v2428_v60 }
 0xd4b   : > { %4012 = vmatmul.mubr.msk.bf16.vlgmr.msra.gmra.mrb[44].mxu1 %vm1380_vm4, %v5644_v48  ;;  %4015 = vmatprep.subr.bf16.mxu0 %v4320_v59  ;;  %v2425_v48 = vmax.f32 %v2412_v1, 0.0 }
 0xd4c   : > { %4025 = vmatprep.mubr.msk.bf16.mxu1 %vm4937_vm0, %v4936_v0 }
 0xd4d   : > { %4006 = vmatmul.mubr.msk.bf16.vlgmr.msra.gmra.mrb[40].mxu0 %vm1107_vm2, %v5646_v51 }
 0xd4e   : > { %4016 = vmatpush3.bf16.msra.mxu0 %v4320_v59 }
 0xd4f   : > { %4017 = vmatprep.subr.bf16.mxu0 %v4321_v61 }
 0xd52   : > { %4018 = vmatpush3.bf16.msra.mxu0 %v4321_v61  ;;  %v4326_v61 = vld [vmem:[#allocation26 + $0x10] sm:$0xff]  }
 0xd53   : > { %4029 = vmatprep.subr.bf16.mxu0 %v4936_v0 }
 0xe1e   : > { %v2508_v5 = vpop.f32.mrb[44].mxu1 }
 0xe1f   : > { %v2509_v6 = vadd.f32 %v2508_v5, %v2427_v2  ;;  %v4013_v7 = vpop.f32.mrb[45].mxu1 }
 0xe20   : > { %v2463_v8 = vpop.f32.mrb[40].mxu0  ;;  %v2511_v9 = vpop.f32.mrb[46].mxu1 }
 0xe21   : > { %v2464_v12 = vadd.f32 %v2463_v8, %v2425_v48  ;;  %v4007_v51 = vpop.f32.mrb[41].mxu0  ;;  %v4014_v13 = vpop.f32.mrb[47].mxu1  ;;  %v2515_v17 = vpack.c.bf16 %v2509_v6, %v2509_v6 }
 0xe22   : > { %v2466_v14 = vpop.f32.mrb[42].mxu0 }
 0xe23   : > { %v2467_v15 = vadd.f32 %v2466_v14, %v2426_v10  ;;  %v4008_v16 = vpop.f32.mrb[43].mxu0  ;;  %v2532_v19 = vsel %vm1045_vm1, %v2515_v17, 0 }
 0xe25   : > { %v2514_v18 = vpack.c.bf16 %v2467_v15, %v2464_v12 }
 0xe27   : > { %4019 = vmatprep.mubr.msk.bf16.mxu0 %vm1045_vm1, %v2514_v18  ;;  %v2529_v11 = vsel %vm1045_vm1, %v2514_v18, 0 }
 0xe28   : > { %4020 = vmatmul.mubr.msk.bf16.vlgmr.msra.gmra.mrb[44].mxu0 %vm1045_vm1, %v2515_v17  ;;  %4024 = vmatpush3.bf16.xpose.msra.mxu1 %v2529_v11 }
 0xe29   : > { %4030 = vmatpush3.bf16.xpose.msra.mxu0 %v2532_v19  ;;  %4031 = vmatprep.mubr.msk.bf16.mxu0 %vm4937_vm0, %v4936_v0 }
 0xe2a   : > { %4043 = vmatprep.subr.bf16.mxu0 %v4322_v20  ;;  %4035 = vmatprep.subr.bf16.mxu1 %v4323_v21 }
 0xefb   : > { %v4021_v3 = vpop.f32.mrb[44].mxu0 }
 0xefc   : > { %v2627_v22 = vpack.c.bf16 %v4021_v3, %v4021_v3  ;;  %v2568_v24 = vpop.f32.mrb[45].mxu0 }
 0xefd   : > { %v4022_v26 = vpop.f32.mrb[46].mxu0 }
 0xefe   : > { %v2571_v27 = vpop.f32.mrb[47].mxu0  ;;  %4032 = vmatmul.mubr.msk.bf16.vlgmr.msra.gmra.mrb[48].mxu0 %vm1045_vm1, %v2627_v22 }
 0xeff   : > { %v2582_v28 = vpack.c.bf16 %v2571_v27, %v2568_v24  ;;  %4044 = vmatpush3.bf16.msra.mxu0 %v4322_v20  ;;  %4047 = vmatprep.mubr.msk.bf16.mxu0 %vm1045_vm1, %v2514_v18 }
 0xf00   : > { %4045 = vmatprep.subr.bf16.mxu0 %v4324_v25 }
 0xf01   : > { %4026 = vmatmul.mubr.msk.bf16.vlgmr.msra.gmra.mrb[48].mxu1 %vm1045_vm1, %v2582_v28 }
 0xf02   : > { %4036 = vmatpush3.bf16.msra.mxu1 %v4323_v21  ;;  %4039 = vmatprep.mubr.msk.bf16.mxu1 %vm1045_vm1, %v2514_v18 }
 0xf03   : > { %4046 = vmatpush3.bf16.msra.mxu0 %v4324_v25  ;;  %4037 = vmatprep.subr.bf16.mxu1 %v4325_v29 }
 0xf04   : > { %4057 = vmatprep.subr.bf16.mxu0 %v4936_v0 }
 0xf06   : > { %4038 = vmatpush3.bf16.msra.mxu1 %v4325_v29  ;;  %4048 = vmatmul.mubr.msk.bf16.vlgmr.msra.gmra.mrb[52].mxu0 %vm1045_vm1, %v2515_v17 }
 0xf07   : > { %4051 = vmatprep.subr.bf16.mxu1 %v4936_v0  ;;  %4059 = vmatprep.mubr.msk.bf16.mxu0 %vm4937_vm0, %v4936_v0 }
 0xf09   : > { %4040 = vmatmul.mubr.msk.bf16.vlgmr.msra.gmra.mrb[52].mxu1 %vm1045_vm1, %v2515_v17 }
 0xf0a   : > { %4053 = vmatprep.mubr.msk.bf16.mxu1 %vm4937_vm0, %v4936_v0 }
 0xfd1   : > { %v2665_v30 = vpop.f32.mrb[48].mxu0 }
 0xfd2   : > { %v4033_v31 = vpop.f32.mrb[49].mxu0  ;;  %v2855_v60 = vpack.c.bf16 %v2665_v30, %v2665_v30 }
 0xfd3   : > { %v2668_v32 = vpop.f32.mrb[50].mxu0 }
 0xfd4   : > { %v2620_v33 = vpop.f32.mrb[48].mxu1  ;;  %v4034_v35 = vpop.f32.mrb[51].mxu0 }
 0xfd5   : > { %v4027_v36 = vpop.f32.mrb[49].mxu1 }
 0xfd6   : > { %v2623_v37 = vpop.f32.mrb[50].mxu1 }
 0xfd7   : > { %v2809_v38 = vpack.c.bf16 %v2623_v37, %v2620_v33  ;;  %v4028_v39 = vpop.f32.mrb[51].mxu1 }
 0xfd9   : > { %v4049_v40 = vpop.f32.mrb[52].mxu0 }
 0xfda   : > { %v2792_v41 = vpop.f32.mrb[53].mxu0  ;;  %v2801_v1 = vadd.f32 %v4049_v40, %v3725_v63 }
 0xfdb   : > { %v4050_v43 = vpop.f32.mrb[54].mxu0  ;;  %v2793_v2 = vadd.f32 %v3725_v63, %v2792_v41 }
 0xfdc   : > { %v4041_v44 = vpop.f32.mrb[52].mxu1  ;;  %v2795_v45 = vpop.f32.mrb[55].mxu0  ;;  %v2808_v4 = vmax.f32 %v2801_v1, 0.0 }
 0xfdd   : > { %v2732_v46 = vadd.f32 %v4041_v44, %v3720_v42  ;;  %v2723_v47 = vpop.f32.mrb[53].mxu1  ;;  %v2796_v5 = vadd.f32 %v3725_v63, %v2795_v45  ;;  %v2806_v6 = vmax.f32 %v2793_v2, 0.0 }
 0xfde   : > { %v2724_v49 = vadd.f32 %v3720_v42, %v2723_v47  ;;  %v4042_v50 = vpop.f32.mrb[54].mxu1 }
 0xfdf   : > { %v2739_v52 = vmax.f32 %v2732_v46, 0.0  ;;  %v2726_v53 = vpop.f32.mrb[55].mxu1  ;;  %v2807_v12 = vmax.f32 %v2796_v5, 0.0 }
 0xfe0   : > { %v2727_v54 = vadd.f32 %v3720_v42, %v2726_v53  ;;  %v2737_v56 = vmax.f32 %v2724_v49, 0.0 }
 0xfe1   : > { %v2856_v55 = vpack.c.bf16 %v2739_v52, %v2739_v52 }
 0xfe2   : > { %v2738_v57 = vmax.f32 %v2727_v54, 0.0 }
 0xfe3   : > { %v2861_v58 = vsel %vm1384_vm3, %v2856_v55, 0 }
 0xfe4   : > { %v2810_v59 = vpack.c.bf16 %v2738_v57, %v2737_v56  ;;  %4058 = vmatpush3.bf16.msra.mxu0 %v2861_v58  ;;  %v4328_v58 = vld [vmem:[%s6051_s19 + $0x20] sm:$0xff]  }
 0xfe5   : > { %4071 = vmatprep.subr.bf16.mxu0 %v4936_v0 }
 0xfe6   : > { %4052 = vmatpush3.bf16.msra.mxu1 %v2810_v59 }
 0xfe7   : > { %4060 = vmatmul.mubr.msk.bf16.vlgmr.msra.gmra.mrb[56].mxu0 %vm1380_vm4, %v2855_v60  ;;  %4063 = vmatprep.subr.bf16.mxu1 %v4936_v0  ;;  %v4330_v60 = vld [vmem:[%s6051_s19 + $0x30] sm:$0xff]  }
 0xfe8   : > { %4073 = vmatprep.mubr.msk.bf16.mxu0 %vm4937_vm0, %v4936_v0 }
 0xfe9   : > { %4054 = vmatmul.mubr.msk.bf16.vlgmr.msra.gmra.mrb[56].mxu1 %vm1107_vm2, %v2809_v38 }
 0xfea   : > { %4067 = vmatprep.mubr.msk.bf16.mxu1 %vm4937_vm0, %v4936_v0  ;;  %4064 = vmatpush3.bf16.msra.mxu1 %v4326_v61  ;;  %v4331_v61 = vld [vmem:[%s6051_s19 + $0x38] sm:$0xff]  }
 0xfeb   : > { %4065 = vmatprep.subr.bf16.mxu1 %v4936_v0 }
 0xfee   : > { %4066 = vmatpush3.bf16.msra.mxu1 %v4327_v62 }
 0xfef   : > { %4077 = vmatprep.subr.bf16.mxu1 %v4936_v0 }
0x10ba   : > { %v2897_v48 = vpop.f32.mrb[56].mxu0 }
0x10bb   : > { %v2898_v7 = vadd.f32 %v2897_v48, %v2808_v4  ;;  %v4061_v8 = vpop.f32.mrb[57].mxu0  ;;  %v4329_v4 = vld [vmem:[%s6051_s19 + $0x28] sm:$0xff]  }
0x10bc   : > { %v2848_v9 = vpop.f32.mrb[56].mxu1  ;;  %v2900_v10 = vpop.f32.mrb[58].mxu0 }
0x10bd   : > { %v5802_v51 = vpack.c.bf16 %v2898_v7, %v2898_v7  ;;  %v2849_v13 = vadd.f32 %v2848_v9, %v2806_v6  ;;  %v4055_v14 = vpop.f32.mrb[57].mxu1  ;;  %v4062_v15 = vpop.f32.mrb[59].mxu0 }
0x10be   : > { %v2851_v16 = vpop.f32.mrb[58].mxu1 }
0x10bf   : > { %v2852_v17 = vadd.f32 %v2851_v16, %v2807_v12  ;;  %v4056_v18 = vpop.f32.mrb[59].mxu1  ;;  %v2966_v11 = vsel %vm1045_vm1, %v5802_v51, 0  ;;  %v3081_v20 = vsel %vm1384_vm3, %v5802_v51, 0 }
0x10c0   : > { %4072 = vmatpush3.bf16.xpose.msra.mxu0 %v2966_v11  ;;  %v3746_v18 = vld [vmem:[%s6052_s8 + $0x1] ss:$0 sm:$0xff] }
0x10c1   : > { %v5806_v19 = vpack.c.bf16 %v2852_v17, %v2849_v13  ;;  %4083 = vmatprep.subr.bf16.mxu0 %v4936_v0 }
0x10c3   : > { %4068 = vmatmul.mubr.msk.bf16.vlgmr.msra.gmra.mrb[60].mxu1 %vm1045_vm1, %v5806_v19 }
0x10c4   : > { %4078 = vmatpush3.bf16.msra.mxu1 %v3081_v20  ;;  %4079 = vmatprep.mubr.msk.bf16.mxu1 %vm4937_vm0, %v4936_v0 }
0x10c5   : > { %4089 = vmatprep.subr.bf16.mxu1 %v4330_v60 }
0x1196   : > { %v2953_v21 = vpop.f32.mrb[60].mxu1 }
0x1197   : > { %v4069_v3 = vpop.f32.mrb[61].mxu1 }
0x1198   : > { %v2956_v22 = vpop.f32.mrb[62].mxu1 }
0x1199   : > { %v2960_v24 = vpack.c.bf16 %v2956_v22, %v2953_v21  ;;  %v4070_v25 = vpop.f32.mrb[63].mxu1 }
0x119b   : > { %4074 = vmatmul.mubr.msk.bf16.vlgmr.msra.gmra.mrb[60].mxu0 %vm1045_vm1, %v2960_v24 }
0x119c   : > { %4084 = vmatpush3.bf16.msra.mxu0 %v5806_v19  ;;  %4085 = vmatprep.mubr.msk.bf16.mxu0 %vm4937_vm0, %v4936_v0 }
0x119d   : > { %4097 = vmatprep.subr.bf16.mxu0 %v4328_v58 }
0x126e   : > { %v3002_v26 = vpop.f32.mrb[60].mxu0 }
0x126f   : > { %v3041_v27 = vsub.f32 %v3002_v26, %v5704_v23  ;;  %3009 = vxpose.xlu1.b32.start [1/2] (short) (narrow) %v3002_v26, 8  ;;  %v4075_v28 = vpop.f32.mrb[61].mxu0 }
0x1270   : > { %v3005_v29 = vpop.f32.mrb[62].mxu0 }
0x1271   : > { %v3042_v30 = vsub.f32 %v3005_v29, %v5704_v23  ;;  %v4076_v31 = vpop.f32.mrb[63].mxu0  ;;  %v3043_v32 = vsel %vm1380_vm4, %v3041_v27, -inf }
0x1272   : > { %3044 = vmax.xlane.f32.xlu0 %v3043_v32 }
0x1273   : > { %3010 = vxpose.xlu1.b32.end [2/2] (short) (narrow) %v3005_v29, 8  ;;  %v3046_v33 = vsel %vm1380_vm4, %v3042_v30, -inf }
0x1276   : > { %3047 = vmax.xlane.f32.xlu0 %v3046_v33 }
0x12ef   : > { %v3025_v35 = vpop.trf.xlu1 }
0x12f0   : > { %v3065_v36 = vsub.f32 %v3025_v35, %v5712_v34 }
0x12f2   : > { %v3066_v0 = vsel %vm1107_vm2, %v3065_v36, -inf }
0x12f3   : > { %3067 = vmax.xlane.f32.xlu0 %v3066_v0 }
0x12ff   : > { %v3045_v37 = vpop.xlane.xlu0 %3044 }
0x1300   : > { %v3049_v38 = vsub.f32 %v3041_v27, %v3045_v37 }
0x1302   : > { %v3051_v39 = vmul.f32 1.442695, %v3049_v38 }
0x1303   : > { %v3048_v40 = vpop.xlane.xlu0 %3047 }
0x1304   : > { %4344 = vpow2.f32 %v3051_v39  ;;  %v3050_v23 = vsub.f32 %v3042_v30, %v3048_v40 }
0x1306   : > { %v3053_v41 = vmul.f32 1.442695, %v3050_v23 }
0x1308   : > { %4346 = vpow2.f32 %v3053_v41 }
0x130e   : > { %v4345_v42 = vpop.eup %4344 }
0x130f   : > { %v3055_v43 = vsel %vm1380_vm4, %v4345_v42, 0.0 }
0x1310   : > { %3056 = vadd.xlane.f32.xlu0 %v3055_v43 }
0x1312   : > { %v4347_v44 = vpop.eup %4346 }
0x1313   : > { %v3058_v45 = vsel %vm1380_vm4, %v4347_v44, 0.0 }
0x1314   : > { %3059 = vadd.xlane.f32.xlu0 %v3058_v45 }
0x1380   : > { %v3068_v34 = vpop.xlane.xlu0 %3067 }
0x1381   : > { %v3069_v46 = vsub.f32 %v3065_v36, %v3068_v34 }
0x1383   : > { %v3070_v47 = vmul.f32 1.442695, %v3069_v46 }
0x1385   : > { %4348 = vpow2.f32 %v3070_v47 }
0x138f   : > { %v4349_v49 = vpop.eup %4348 }
0x1390   : > { %v3072_v50 = vsel %vm1107_vm2, %v4349_v49, 0.0 }
0x1391   : > { %3073 = vadd.xlane.f32.xlu0 %v3072_v50 }
0x139d   : > { %v3057_v52 = vpop.xlane.xlu0 %3056 }
0x139e   : > { %4350 = vrcp.f32 %v3057_v52 }
0x13a1   : > { %v3060_v53 = vpop.xlane.xlu0 %3059 }
0x13a2   : > { %4352 = vrcp.f32 %v3060_v53 }
0x13a8   : > { %v4351_v54 = vpop.eup %4350 }
0x13a9   : > { %v3063_v56 = vmul.f32 %v4351_v54, %v4345_v42 }
0x13ac   : > { %v4353_v55 = vpop.eup %4352 }
0x13ad   : > { %v3064_v57 = vmul.f32 %v4353_v55, %v4347_v44 }
0x13af   : > { %v3077_v59 = vpack.c.bf16 %v3064_v57, %v3063_v56 }
0x13b1   : > { %4080 = vmatmul.mubr.msk.bf16.vlgmr.msra.gmra.mrb[64].mxu1 %vm1380_vm4, %v3077_v59 }
0x13b2   : > { %4090 = vmatpush3.bf16.msra.mxu1 %v4330_v60 }
0x13b3   : > { %4091 = vmatprep.subr.bf16.mxu1 %v4331_v61 }
0x13b6   : > { %4092 = vmatpush3.bf16.msra.mxu1 %v4331_v61 }
0x141e   : > { %v3074_v62 = vpop.xlane.xlu0 %3073 }
0x141f   : > { %4354 = vrcp.f32 %v3074_v62 }
0x1429   : > { %v4355_v63 = vpop.eup %4354 }
0x142a   : > { %v3076_v1 = vmul.f32 %v4355_v63, %v4349_v49 }
0x142c   : > { %v3124_v2 = vpack.c.bf16 %v3076_v1, %v3076_v1 }
0x142e   : > { %4086 = vmatmul.mubr.msk.bf16.vlgmr.msra.gmra.mrb[64].mxu0 %vm1107_vm2, %v3124_v2 }
0x142f   : > { %4098 = vmatpush3.bf16.msra.mxu0 %v4328_v58  ;;  %4101 = vmatprep.mubr.msk.bf16.mxu0 %vm1045_vm1, %v5806_v19 }
0x1430   : > { %4099 = vmatprep.subr.bf16.mxu0 %v4329_v4 }
0x1433   : > { %4100 = vmatpush3.bf16.msra.mxu0 %v4329_v4 }
0x1436   : > { %4102 = vmatmul.mubr.msk.bf16.vlgmr.msra.gmra.mrb[68].mxu0 %vm1045_vm1, %v5802_v51 }
0x1484   : > { %v3117_v5 = vpop.f32.mrb[64].mxu1 }
0x1485   : > { %v4081_v48 = vpop.f32.mrb[65].mxu1 }
0x1486   : > { %v3120_v6 = vpop.f32.mrb[66].mxu1 }
0x1487   : > { %v3168_v7 = vpack.c.bf16 %v3120_v6, %v3117_v5  ;;  %v4082_v8 = vpop.f32.mrb[67].mxu1 }
0x1489   : > { %4093 = vmatprep.mubr.msk.bf16.mxu1 %vm1045_vm1, %v3168_v7 }
0x1501   : > { %v3162_v9 = vpop.f32.mrb[64].mxu0 }
0x1502   : > { %v3169_v10 = vpack.c.bf16 %v3162_v9, %v3162_v9  ;;  %v4087_v12 = vpop.f32.mrb[65].mxu0 }
0x1503   : > { %v3165_v13 = vpop.f32.mrb[66].mxu0 }
0x1504   : > { %v4088_v14 = vpop.f32.mrb[67].mxu0  ;;  %4094 = vmatmul.mubr.msk.bf16.vlgmr.msra.gmra.mrb[68].mxu1 %vm1045_vm1, %v3169_v10 }
0x1509   : > { %v4103_v15 = vpop.f32.mrb[68].mxu0 }
0x150a   : > { %v3282_v16 = vpop.f32.mrb[69].mxu0 }
0x150b   : > { %v4104_v17 = vpop.f32.mrb[70].mxu0 }
0x150c   : > { %v3285_v51 = vpop.f32.mrb[71].mxu0 }
0x15d7   : > { %v4095_v11 = vpop.f32.mrb[68].mxu1 }
0x15d8   : > { %v3291_v19 = vadd.f32 %v4103_v15, %v4095_v11  ;;  %v3222_v20 = vpop.f32.mrb[69].mxu1 }
0x15d9   : > { %v3283_v21 = vadd.f32 %v3282_v16, %v3222_v20  ;;  %v4096_v3 = vpop.f32.mrb[70].mxu1 }
0x15da   : > { %v3304_v22 = vadd.f32 %v3746_v18, %v3291_v19  ;;  %v3225_v24 = vpop.f32.mrb[71].mxu1 }
0x15db   : > { %v3302_v25 = vadd.f32 %v3746_v18, %v3283_v21  ;;  %v3286_v26 = vadd.f32 %v3285_v51, %v3225_v24 }
0x15dc   : > { %3307 = vst.msk [vmem:[%s1000_s10 + $0x10] sm:$0xff] %vm1045_vm1, %v3304_v22 }
0x15dd   : > { %3305 = vst.msk [vmem:[%s1000_s10] sm:$0xff] %vm1045_vm1, %v3302_v25  ;;  %v3303_v27 = vadd.f32 %v3746_v18, %v3286_v26 }
0x15df   : > { %3306 = vst.msk [vmem:[%s1000_s10 + $0x8] sm:$0xff] %vm1045_vm1, %v3303_v27 }
0x15e0   : > { %4825 = shalt.err (!%p4822_p7)
}
0x15e1   : > { %s4826_s18 = scalar_lea.hbm %s5860_s5, 384  ;;  %s4830_s10 = scalar_lea.hbm %s6053_s0, 768 }
0x15e2   : > { %p4827_p2 = scmp.ne.s32.totalorder %s5860_s5, %s4826_s18  ;;  %p4831_p3 = scmp.lt.u32.totalorder %s5860_s5, %s6053_s0 }
0x15e3   : > { %p4832_p6 = scmp.lt.u32.totalorder %s4830_s10, %s4826_s18  ;;  %p4834_p9 = scmp.lt.u32.totalorder %s4826_s18, %s5860_s5 }
0x15e4   : > { %p4828_p0 = pnand %p4827_p2, %p6054_p8 }
0x15e5   : > { %p4833_p10 = por %p4832_p6, %p4831_p3 }
0x15e6   : > { %p4829_p5 = pneg %p4828_p0 }
0x15e7   : > { %p4835_p13 = por %p4834_p9, %p4833_p10 }
0x15e9   : > { %p4836_p1 = pnand %p4835_p13, %p4829_p5 }
0x15eb   : > { %4839 = shalt.err (!%p4836_p1)
}
0x15ec   : > { %s4939_s3 = smov 128   ;;  %s4940_s17 = smov 8  }
0x15ed   : > { %4163 = dma.vmem_to_hbm [thread:$0]  (%p6054_p8), %s5853_s27, 384, %s5860_s5, %s3309_s23, %s4939_s3, %s4939_s3, %s4940_s17  }
0x15ee PF: > { %s6055_s9 = sld [smem:[#allocation40_spill]]  ;;  %s6056_s4 = sld [smem:[#allocation45_spill]] }
0x15ef   : > { %p6058_p12 = scmp.ge.s32.totalorder %s4914_s30, 2 }
0x15f4   : > { %s3337_s24 = sand.u32 1, %s6055_s9   ;;  %p6057_p11 = scmp.ne.s32.totalorder %s6056_s4, 0 }
0x15f5   : > { %s3338_s18 = scalar_lea.sflag [#allocation4], %s3337_s24 }
0x15f6   : > { %p4216_p4 = pnand %p6058_p12, %p6057_p11 }
0x15f8   : > { %4897 = dma.done.wait (!%p4216_p4), %s3338_s18, 384  }
0x15f9   : > { %4899 = vsyncadd (!%p4216_p4), %s3338_s18, 4294966912  ;;  %s6059_s30 = sld [smem:[#allocation43_spill]]  ;;  %s6060_s29 = sld [smem:[#allocation41_spill]] }
0x15fa   : > { %s6061_s21 = sld [smem:[#allocation44_spill]]  ;;  %s6062_s3 = smov %s4906_s28 }
0x15ff   : > { %p47_p7 = scmp.ge.s32.totalorder %s6059_s30, 4   ;;  %s6063_s28 = smov %s6060_s29 }
0x1600   : > { %s6064_s29 = smov %s6061_s21 }
0x1601   :  { %49 = sbr.rel (!%p47_p7) target bundleno = 36 (0x24), region = 256 }
0x1608   :  { %3343 = vsyncpa [#allocation3], 1 }
0x1609   :  { %3345 = vsyncpa [#allocation3 + $0x1], 1 }
0x160a   :  { %3346 = vsyncpa [#allocation6], 1 }
0x160b   :  { %3348 = vsyncpa [#allocation6 + $0x1], 1 }
0x160c   :  { %3349 = vsyncpa [#allocation9], 1 }
0x160d   :  { %3351 = vsyncpa [#allocation9 + $0x1], 1 }
0x160e   :  { %3352 = vsyncpa [#allocation12], 1 }
0x160f   :  { %3353 = vsyncpa [#allocation15], 1 }
0x1610   :  { %3354 = vsyncpa [#allocation18], 1 }
0x1611   :  { %3355 = vsyncpa [#allocation21], 1 }
0x1612   :  { %3356 = vsyncpa [#allocation24], 1 }
0x1613   :  { %3357 = vsyncpa [#allocation27], 1 }
0x1614   :  { %3358 = vsyncpa [#allocation4], 1 }
0x1615   :  { %3360 = vsyncpa [#allocation4 + $0x1], 1 }

</bundles_post_ra>
